<compile_context>
chip_gen: v5e
topology: v5e:2x2
jax: 0.10.0
libtpu: 0.0.40
codegen_flags: <defaults>
</compile_context>

<pallas_src>
import jax
import jax.numpy as jnp
import numpy as np
from jax import lax
from jax.experimental import pallas as pl
from jax.experimental.pallas import tpu as pltpu


def _round_up(x, m):
    return ((x + m - 1) // m) * m


def _segmenthead_kernel(band_ref, s1_ref, b1_ref, w1c_ref, b2_ref, w2_ref,
                        cb2_ref, o_ref, col_ref):
    """One (image, row-tile) step of segmenthead.forward.

    band_ref : (1, tile_h+2, Wp_a, Cin) f32  spatially zero-padded input band
    s1_ref   : (1, 1, Cin) f32               bn1 scale
    b1_ref   : (1, 1, Cin) f32               bn1 bias
    w1c_ref  : (9*Cin, Cmid_p) bf16          im2col conv1 weight (bn2 scale folded in)
    b2_ref   : (1, Cmid_p) f32               bn2 bias
    w2_ref   : (Cmid_p, Cout_p) bf16         1x1 conv2 weight
    cb2_ref  : (1, Cout_p) f32               conv2 bias
    o_ref    : (1, tile_h, W, Cout_p)        lane-dense output tile
    col_ref  : (tile_h*W, 9*Cin) bf16 VMEM   im2col staging slab
    """
    r = pl.program_id(1)
    bh, wp, cin = band_ref.shape[1], band_ref.shape[2], band_ref.shape[3]
    tile_h = bh - 2
    w_out = o_ref.shape[2]
    cout_p = o_ref.shape[3]
    h_total = tile_h * pl.num_programs(1)
    m_rows = tile_h * w_out

    # bn1 + ReLU in f32 on the raw (f32) input band.
    a = jnp.maximum(band_ref[0] * s1_ref[...] + b1_ref[...], 0.0)

    # conv1's padding=1 zero-pads the *activation* (post bn1+ReLU), so zero out
    # every band position that is not a real image pixel (outer halo rows of
    # the first/last row tiles and the left/right pad columns).
    row_g = r * tile_h + lax.broadcasted_iota(jnp.int32, (bh, wp, cin), 0)
    col_g = lax.broadcasted_iota(jnp.int32, (bh, wp, cin), 1)
    valid = (row_g >= 1) & (row_g <= h_total) & (col_g >= 1) & (col_g <= w_out)
    a = jnp.where(valid, a, 0.0).astype(jnp.bfloat16)

    # im2col staging: 9 statically shifted (tile_h, W, Cin) windows packed
    # along the contraction axis of one bf16 slab (tap-major K ordering).
    for t in range(9):
        dy, dx = divmod(t, 3)
        win = a[dy:dy + tile_h, dx:dx + w_out, :]
        col_ref[:, t * cin:(t + 1) * cin] = win.reshape(m_rows, cin)

    # conv1 (bn2 scale pre-folded into w1c) as ONE K=9*Cin MXU dot, then
    # bn2 bias + ReLU (f32).
    mid = jnp.dot(col_ref[...], w1c_ref[...], preferred_element_type=jnp.float32)
    mid = jnp.maximum(mid + b2_ref[...], 0.0)

    # 1x1 conv2 (+bias) into the lane-dense output tile.
    out = jnp.dot(mid.astype(jnp.bfloat16), w2_ref[...],
                  preferred_element_type=jnp.float32) + cb2_ref[...]
    o_ref[0] = out.reshape(tile_h, w_out, cout_p).astype(o_ref.dtype)


def _pick_tile_h(H, W, Cin, cout_p, out_itemsize, budget=1 << 20):
    """Largest divisor of H whose per-step blocks stay within ~`budget` bytes."""
    best = 1
    for t in range(1, H + 1):
        if H % t:
            continue
        out_bytes = t * W * cout_p * out_itemsize
        col_bytes = t * W * 9 * Cin * 2
        band_bytes = (t + 2) * _round_up(W + 2, 8) * Cin * 4
        if max(out_bytes, col_bytes, band_bytes) <= budget:
            best = t
    return best


def segmenthead_pallas(x_nchw, params, scale_factor=None, tile_h=None,
                       out_dtype=jnp.bfloat16):
    s1, b1, w1_flat, s2, b2, w2_mat, cb2 = params
    N, Cin, H, W = x_nchw.shape
    Cmid = w1_flat.shape[2]
    Cout = w2_mat.shape[1]
    f32 = jnp.float32

    # Lane-dense padding of the channel dims that become MXU output lanes.
    Cmid_p = _round_up(Cmid, 128)
    Cout_p = _round_up(Cout, 128)

    # Fold the bn2 *scale* into the conv1 weight and pack it as an im2col
    # matrix with K = 9*Cin (tap-major, matching the kernel's slab layout).
    w1_scaled = w1_flat * s2.reshape(1, 1, Cmid)
    w1c = jnp.zeros((9 * Cin, Cmid_p), f32).at[:, :Cmid].set(
        w1_scaled.reshape(9 * Cin, Cmid)).astype(jnp.bfloat16)
    b2_p = jnp.zeros((1, Cmid_p), f32).at[:, :Cmid].set(b2)
    w2_p = jnp.zeros((Cmid_p, Cout_p), f32).at[:Cmid, :Cout].set(w2_mat).astype(jnp.bfloat16)
    cb2_p = jnp.zeros((1, Cout_p), f32).at[:, :Cout].set(cb2)

    if tile_h is None:
        tile_h = _pick_tile_h(H, W, Cin, Cout_p, jnp.dtype(out_dtype).itemsize)
    assert H % tile_h == 0, (H, tile_h)
    n_tiles = H // tile_h
    bh = tile_h + 2
    Wp_a = _round_up(W + 2, 8)            # sublane-aligned padded width

    # NCHW -> NHWC, keep f32 (bn1 is applied to full-precision input in-kernel),
    # zero-pad spatially, then gather overlapping (tile_h+2)-row halo bands so
    # BlockSpec auto-pipelining can stream band-sized blocks.
    # TODO(synk): halo rows are duplicated in HBM ((tile_h+2)/tile_h extra input
    # reads); a manual make_async_copy halo pipeline from an un-duplicated
    # padded image would avoid that at the cost of hand-rolled double-buffering.
    x_nhwc = jnp.transpose(x_nchw, (0, 2, 3, 1)).astype(f32)
    xp = jnp.zeros((N, H + 2, Wp_a, Cin), f32).at[:, 1:H + 1, 1:W + 1, :].set(x_nhwc)
    row_idx = jnp.arange(n_tiles)[:, None] * tile_h + jnp.arange(bh)[None, :]
    bands = xp[:, row_idx]                               # (N, n_tiles, bh, Wp_a, Cin)
    bands = bands.reshape(N * n_tiles, bh, Wp_a, Cin)

    out_nhwc = pl.pallas_call(
        _segmenthead_kernel,
        out_shape=jax.ShapeDtypeStruct((N, H, W, Cout_p), out_dtype),
        grid_spec=pltpu.PrefetchScalarGridSpec(
            num_scalar_prefetch=0,
            grid=(N, n_tiles),
            in_specs=[
                pl.BlockSpec((1, bh, Wp_a, Cin),
                             lambda n, r: (n * n_tiles + r, 0, 0, 0)),   # input band
                pl.BlockSpec((1, 1, Cin), lambda n, r: (0, 0, 0)),       # bn1 scale
                pl.BlockSpec((1, 1, Cin), lambda n, r: (0, 0, 0)),       # bn1 bias
                pl.BlockSpec((9 * Cin, Cmid_p), lambda n, r: (0, 0)),    # conv1 im2col wt
                pl.BlockSpec((1, Cmid_p), lambda n, r: (0, 0)),          # bn2 bias
                pl.BlockSpec((Cmid_p, Cout_p), lambda n, r: (0, 0)),     # conv2 weight
                pl.BlockSpec((1, Cout_p), lambda n, r: (0, 0)),          # conv2 bias
            ],
            out_specs=pl.BlockSpec((1, tile_h, W, Cout_p), lambda n, r: (n, r, 0, 0)),
            scratch_shapes=[
                pltpu.VMEM((tile_h * W, 9 * Cin), jnp.bfloat16),         # im2col slab
            ],
        ),
        compiler_params=pltpu.CompilerParams(
            dimension_semantics=("parallel", "parallel"),
            vmem_limit_bytes=48 * 1024 * 1024),
    )(bands, s1, b1, w1c, b2_p, w2_p, cb2_p)

    # Back to the PyTorch NCHW/f32 interface (slice lane padding, transpose).
    # TODO(synk): downstream consumers could keep the NHWC lane-padded layout
    # and fuse this slice/transpose away.
    out = jnp.transpose(out_nhwc[..., :Cout].astype(f32), (0, 3, 1, 2))

    if scale_factor is not None:
        # TODO(synk): bilinear upsample stays wrapper-side (jax.image.resize),
        # matching F.interpolate(mode='bilinear'); not fused into the kernel.
        out = jax.image.resize(out, (N, Cout, H * scale_factor, W * scale_factor),
                               method="bilinear")
    return out


def init_params(key, inplanes, interplanes, outplanes, eps=1e-5):
    """Deterministic synthetic parameters (BN folded to scale/bias)."""
    ks = jax.random.split(key, 10)

    # BatchNorm2d(inplanes), inference mode.
    g1 = 1.0 + 0.1 * jax.random.normal(ks[0], (inplanes,), jnp.float32)
    be1 = 0.1 * jax.random.normal(ks[1], (inplanes,), jnp.float32)
    rm1 = 0.1 * jax.random.normal(ks[2], (inplanes,), jnp.float32)
    rv1 = jnp.abs(jax.random.normal(ks[3], (inplanes,), jnp.float32)) + 0.5
    scale1 = g1 / jnp.sqrt(rv1 + eps)
    bias1 = be1 - rm1 * scale1

    # Conv2d(inplanes, interplanes, 3, padding=1, bias=False): OIHW -> HWIO.
    w1_oihw = 0.1 * jax.random.normal(ks[4], (interplanes, inplanes, 3, 3), jnp.float32)
    w1_hwio = jnp.transpose(w1_oihw, (2, 3, 1, 0))                  # (3,3,Cin,Cmid)
    w1_flat = w1_hwio.reshape(9, inplanes, interplanes)

    # BatchNorm2d(interplanes), inference mode.
    g2 = 1.0 + 0.1 * jax.random.normal(ks[5], (interplanes,), jnp.float32)
    be2 = 0.1 * jax.random.normal(ks[6], (interplanes,), jnp.float32)
    rm2 = 0.1 * jax.random.normal(ks[7], (interplanes,), jnp.float32)
    rv2 = jnp.abs(jax.random.normal(ks[8], (interplanes,), jnp.float32)) + 0.5
    scale2 = g2 / jnp.sqrt(rv2 + eps)
    bias2 = be2 - rm2 * scale2

    # Conv2d(interplanes, outplanes, 1, bias=True).
    w2_oihw = 0.1 * jax.random.normal(ks[9], (outplanes, interplanes, 1, 1), jnp.float32)
    w2_mat = jnp.transpose(w2_oihw[:, :, 0, 0], (1, 0))             # (Cmid, Cout)
    cb2 = 0.1 * jax.random.normal(jax.random.fold_in(key, 99), (outplanes,), jnp.float32)

    params = (scale1.reshape(1, 1, inplanes), bias1.reshape(1, 1, inplanes),
              w1_flat,
              scale2.reshape(1, interplanes), bias2.reshape(1, interplanes),
              w2_mat, cb2.reshape(1, outplanes))
    hwio_weights = (w1_hwio, jnp.transpose(w2_oihw, (2, 3, 1, 0)))
    return params, hwio_weights


def reference(x_nchw, params, hwio_weights, scale_factor=None):
    """Pure-JAX reference of segmenthead.forward (inference-mode BN)."""
    s1, b1, _, s2, b2, _, cb2 = params
    w1_hwio, w2_hwio = hwio_weights
    x = jnp.transpose(x_nchw, (0, 2, 3, 1)).astype(jnp.float32)
    a = jnp.maximum(x * s1 + b1, 0.0)
    y = lax.conv_general_dilated(a, w1_hwio, window_strides=(1, 1), padding="SAME",
                                 dimension_numbers=("NHWC", "HWIO", "NHWC"))
    bact = jnp.maximum(y * s2.reshape(1, 1, 1, -1) + b2.reshape(1, 1, 1, -1), 0.0)
    z = lax.conv_general_dilated(bact, w2_hwio, window_strides=(1, 1), padding="SAME",
                                 dimension_numbers=("NHWC", "HWIO", "NHWC"))
    z = z + cb2.reshape(1, 1, 1, -1)
    out = jnp.transpose(z, (0, 3, 1, 2))
    if scale_factor is not None:
        H, W = x.shape[1], x.shape[2]
        out = jax.image.resize(out, (out.shape[0], out.shape[1],
                                     H * scale_factor, W * scale_factor),
                               method="bilinear")
    return out


if __name__ == "__main__":
    key = jax.random.PRNGKey(0)
    inplanes, interplanes, outplanes = 4, 8, 5
    N, H, W = 2, 16, 16

    kp, kx = jax.random.split(key)
    params, hwio_weights = init_params(kp, inplanes, interplanes, outplanes)
    x = jax.random.normal(kx, (N, inplanes, H, W), jnp.float32)     # NCHW input

    # tile_h=8 exercises the multi-row-tile grid; tile_h=None auto-sizes it.
    out = segmenthead_pallas(x, params, scale_factor=None, tile_h=8)
    out = jax.block_until_ready(out)

    ref = jax.block_until_ready(reference(x, params, hwio_weights, scale_factor=None))
    assert out.shape == (N, outplanes, H, W), out.shape
    # bf16 MXU operands + bf16 output store (f32 accumulation) -> loose tolerance.
    np.testing.assert_allclose(np.asarray(out), np.asarray(ref), rtol=2e-2, atol=2e-2)

    print("KERNEL_OK")
</pallas_src>

<mosaic_0001>
module attributes {stable_mosaic.version = 11 : i64} {
  func.func @_segmenthead_kernel(%arg0: i32, %arg1: i32, %arg2: memref<1x10x24x4xf32, #tpu.memory_space<vmem>>, %arg3: memref<1x1x4xf32, #tpu.memory_space<vmem>>, %arg4: memref<1x1x4xf32, #tpu.memory_space<vmem>>, %arg5: memref<36x128xbf16, #tpu.memory_space<vmem>>, %arg6: memref<1x128xf32, #tpu.memory_space<vmem>>, %arg7: memref<128x128xbf16, #tpu.memory_space<vmem>>, %arg8: memref<1x128xf32, #tpu.memory_space<vmem>>, %arg9: memref<1x8x16x128xbf16, #tpu.memory_space<vmem>>, %arg10: memref<128x36xbf16, #tpu.memory_space<vmem>>) attributes {dimension_semantics = [#tpu.dimension_semantics<parallel>, #tpu.dimension_semantics<parallel>], iteration_bounds = array<i64: 2, 2>, scalar_prefetch = 0 : i64, scratch_operands = 1 : i64, tpu.core_type = #tpu.core_type<tc>, window_params = [{transform_indices = @transform_0, window_bounds = array<i64: 1, 10, 24, 4>}, {pipeline_mode = #tpu.pipeline_mode<synchronous>, transform_indices = @transform_1, window_bounds = array<i64: 1, 1, 4>}, {pipeline_mode = #tpu.pipeline_mode<synchronous>, transform_indices = @transform_2, window_bounds = array<i64: 1, 1, 4>}, {pipeline_mode = #tpu.pipeline_mode<synchronous>, transform_indices = @transform_3, window_bounds = array<i64: 36, 128>}, {pipeline_mode = #tpu.pipeline_mode<synchronous>, transform_indices = @transform_4, window_bounds = array<i64: 1, 128>}, {pipeline_mode = #tpu.pipeline_mode<synchronous>, transform_indices = @transform_5, window_bounds = array<i64: 128, 128>}, {pipeline_mode = #tpu.pipeline_mode<synchronous>, transform_indices = @transform_6, window_bounds = array<i64: 1, 128>}, {transform_indices = @transform_7, window_bounds = array<i64: 1, 8, 16, 128>}]} {
    %c0 = arith.constant 0 : index
    %c0_0 = arith.constant 0 : index
    %c0_1 = arith.constant 0 : index
    %c0_2 = arith.constant 0 : index
    %0 = vector.load %arg2[%c0, %c0_0, %c0_1, %c0_2] : memref<1x10x24x4xf32, #tpu.memory_space<vmem>>, vector<1x10x24x4xf32>
    %1 = vector.shape_cast %0 : vector<1x10x24x4xf32> to vector<10x24x4xf32>
    %c0_3 = arith.constant 0 : index
    %c0_4 = arith.constant 0 : index
    %c0_5 = arith.constant 0 : index
    %2 = vector.load %arg3[%c0_3, %c0_4, %c0_5] : memref<1x1x4xf32, #tpu.memory_space<vmem>>, vector<1x1x4xf32>
    %3 = vector.broadcast %2 : vector<1x1x4xf32> to vector<10x24x4xf32>
    %4 = arith.mulf %1, %3 : vector<10x24x4xf32>
    %c0_6 = arith.constant 0 : index
    %c0_7 = arith.constant 0 : index
    %c0_8 = arith.constant 0 : index
    %5 = vector.load %arg4[%c0_6, %c0_7, %c0_8] : memref<1x1x4xf32, #tpu.memory_space<vmem>>, vector<1x1x4xf32>
    %6 = vector.broadcast %5 : vector<1x1x4xf32> to vector<10x24x4xf32>
    %7 = arith.addf %4, %6 : vector<10x24x4xf32>
    %cst = arith.constant 0.000000e+00 : f32
    %8 = vector.broadcast %cst : f32 to vector<10x24x4xf32>
    %9 = arith.maximumf %7, %8 : vector<10x24x4xf32>
    %c8_i32 = arith.constant 8 : i32
    %10 = arith.muli %arg1, %c8_i32 : i32
    %11 = tpu.iota {dimensions = array<i32: 0>} : vector<10x24x4xi32>
    %12 = vector.broadcast %10 : i32 to vector<10x24x4xi32>
    %13 = arith.addi %12, %11 : vector<10x24x4xi32>
    %14 = tpu.iota {dimensions = array<i32: 1>} : vector<10x24x4xi32>
    %c1_i32 = arith.constant 1 : i32
    %15 = vector.broadcast %c1_i32 : i32 to vector<10x24x4xi32>
    %16 = arith.cmpi sge, %13, %15 : vector<10x24x4xi32>
    %c16_i32 = arith.constant 16 : i32
    %17 = vector.broadcast %c16_i32 : i32 to vector<10x24x4xi32>
    %18 = arith.cmpi sle, %13, %17 : vector<10x24x4xi32>
    %19 = arith.andi %16, %18 : vector<10x24x4xi1>
    %c1_i32_9 = arith.constant 1 : i32
    %20 = vector.broadcast %c1_i32_9 : i32 to vector<10x24x4xi32>
    %21 = arith.cmpi sge, %14, %20 : vector<10x24x4xi32>
    %22 = arith.andi %19, %21 : vector<10x24x4xi1>
    %c16_i32_10 = arith.constant 16 : i32
    %23 = vector.broadcast %c16_i32_10 : i32 to vector<10x24x4xi32>
    %24 = arith.cmpi sle, %14, %23 : vector<10x24x4xi32>
    %25 = arith.andi %22, %24 : vector<10x24x4xi1>
    %cst_11 = arith.constant 0.000000e+00 : f32
    %26 = vector.broadcast %cst_11 : f32 to vector<10x24x4xf32>
    %27 = arith.select %25, %9, %26 : vector<10x24x4xi1>, vector<10x24x4xf32>
    %28 = arith.truncf %27 : vector<10x24x4xf32> to vector<10x24x4xbf16>
    %29 = vector.extract_strided_slice %28 {offsets = [0, 0, 0], sizes = [8, 16, 4], strides = [1, 1, 1]} : vector<10x24x4xbf16> to vector<8x16x4xbf16>
    %30 = vector.shape_cast %29 : vector<8x16x4xbf16> to vector<128x4xbf16>
    %c0_12 = arith.constant 0 : index
    %c0_13 = arith.constant 0 : index
    %31 = vector.load %arg10[%c0_12, %c0_13] : memref<128x36xbf16, #tpu.memory_space<vmem>>, vector<128x4xbf16>
    tpu.vector_store %arg10[%c0_12, %c0_13], %30 {strides = array<i32>} : memref<128x36xbf16, #tpu.memory_space<vmem>>, vector<128x4xbf16>,
    %32 = vector.extract_strided_slice %28 {offsets = [0, 1, 0], sizes = [8, 16, 4], strides = [1, 1, 1]} : vector<10x24x4xbf16> to vector<8x16x4xbf16>
    %33 = vector.shape_cast %32 : vector<8x16x4xbf16> to vector<128x4xbf16>
    %c0_14 = arith.constant 0 : index
    %c4 = arith.constant 4 : index
    %34 = vector.load %arg10[%c0_14, %c4] : memref<128x36xbf16, #tpu.memory_space<vmem>>, vector<128x4xbf16>
    tpu.vector_store %arg10[%c0_14, %c4], %33 {strides = array<i32>} : memref<128x36xbf16, #tpu.memory_space<vmem>>, vector<128x4xbf16>,
    %35 = vector.extract_strided_slice %28 {offsets = [0, 2, 0], sizes = [8, 16, 4], strides = [1, 1, 1]} : vector<10x24x4xbf16> to vector<8x16x4xbf16>
    %36 = vector.shape_cast %35 : vector<8x16x4xbf16> to vector<128x4xbf16>
    %c0_15 = arith.constant 0 : index
    %c8 = arith.constant 8 : index
    %37 = vector.load %arg10[%c0_15, %c8] : memref<128x36xbf16, #tpu.memory_space<vmem>>, vector<128x4xbf16>
    tpu.vector_store %arg10[%c0_15, %c8], %36 {strides = array<i32>} : memref<128x36xbf16, #tpu.memory_space<vmem>>, vector<128x4xbf16>,
    %38 = vector.extract_strided_slice %28 {offsets = [1, 0, 0], sizes = [8, 16, 4], strides = [1, 1, 1]} : vector<10x24x4xbf16> to vector<8x16x4xbf16>
    %39 = vector.shape_cast %38 : vector<8x16x4xbf16> to vector<128x4xbf16>
    %c0_16 = arith.constant 0 : index
    %c12 = arith.constant 12 : index
    %40 = vector.load %arg10[%c0_16, %c12] : memref<128x36xbf16, #tpu.memory_space<vmem>>, vector<128x4xbf16>
    tpu.vector_store %arg10[%c0_16, %c12], %39 {strides = array<i32>} : memref<128x36xbf16, #tpu.memory_space<vmem>>, vector<128x4xbf16>,
    %41 = vector.extract_strided_slice %28 {offsets = [1, 1, 0], sizes = [8, 16, 4], strides = [1, 1, 1]} : vector<10x24x4xbf16> to vector<8x16x4xbf16>
    %42 = vector.shape_cast %41 : vector<8x16x4xbf16> to vector<128x4xbf16>
    %c0_17 = arith.constant 0 : index
    %c16 = arith.constant 16 : index
    %43 = vector.load %arg10[%c0_17, %c16] : memref<128x36xbf16, #tpu.memory_space<vmem>>, vector<128x4xbf16>
    tpu.vector_store %arg10[%c0_17, %c16], %42 {strides = array<i32>} : memref<128x36xbf16, #tpu.memory_space<vmem>>, vector<128x4xbf16>,
    %44 = vector.extract_strided_slice %28 {offsets = [1, 2, 0], sizes = [8, 16, 4], strides = [1, 1, 1]} : vector<10x24x4xbf16> to vector<8x16x4xbf16>
    %45 = vector.shape_cast %44 : vector<8x16x4xbf16> to vector<128x4xbf16>
    %c0_18 = arith.constant 0 : index
    %c20 = arith.constant 20 : index
    %46 = vector.load %arg10[%c0_18, %c20] : memref<128x36xbf16, #tpu.memory_space<vmem>>, vector<128x4xbf16>
    tpu.vector_store %arg10[%c0_18, %c20], %45 {strides = array<i32>} : memref<128x36xbf16, #tpu.memory_space<vmem>>, vector<128x4xbf16>,
    %47 = vector.extract_strided_slice %28 {offsets = [2, 0, 0], sizes = [8, 16, 4], strides = [1, 1, 1]} : vector<10x24x4xbf16> to vector<8x16x4xbf16>
    %48 = vector.shape_cast %47 : vector<8x16x4xbf16> to vector<128x4xbf16>
    %c0_19 = arith.constant 0 : index
    %c24 = arith.constant 24 : index
    %49 = vector.load %arg10[%c0_19, %c24] : memref<128x36xbf16, #tpu.memory_space<vmem>>, vector<128x4xbf16>
    tpu.vector_store %arg10[%c0_19, %c24], %48 {strides = array<i32>} : memref<128x36xbf16, #tpu.memory_space<vmem>>, vector<128x4xbf16>,
    %50 = vector.extract_strided_slice %28 {offsets = [2, 1, 0], sizes = [8, 16, 4], strides = [1, 1, 1]} : vector<10x24x4xbf16> to vector<8x16x4xbf16>
    %51 = vector.shape_cast %50 : vector<8x16x4xbf16> to vector<128x4xbf16>
    %c0_20 = arith.constant 0 : index
    %c28 = arith.constant 28 : index
    %52 = vector.load %arg10[%c0_20, %c28] : memref<128x36xbf16, #tpu.memory_space<vmem>>, vector<128x4xbf16>
    tpu.vector_store %arg10[%c0_20, %c28], %51 {strides = array<i32>} : memref<128x36xbf16, #tpu.memory_space<vmem>>, vector<128x4xbf16>,
    %53 = vector.extract_strided_slice %28 {offsets = [2, 2, 0], sizes = [8, 16, 4], strides = [1, 1, 1]} : vector<10x24x4xbf16> to vector<8x16x4xbf16>
    %54 = vector.shape_cast %53 : vector<8x16x4xbf16> to vector<128x4xbf16>
    %c0_21 = arith.constant 0 : index
    %c32 = arith.constant 32 : index
    %55 = vector.load %arg10[%c0_21, %c32] : memref<128x36xbf16, #tpu.memory_space<vmem>>, vector<128x4xbf16>
    tpu.vector_store %arg10[%c0_21, %c32], %54 {strides = array<i32>} : memref<128x36xbf16, #tpu.memory_space<vmem>>, vector<128x4xbf16>,
    %c0_22 = arith.constant 0 : index
    %c0_23 = arith.constant 0 : index
    %56 = vector.load %arg10[%c0_22, %c0_23] : memref<128x36xbf16, #tpu.memory_space<vmem>>, vector<128x36xbf16>
    %c0_24 = arith.constant 0 : index
    %c0_25 = arith.constant 0 : index
    %57 = vector.load %arg5[%c0_24, %c0_25] : memref<36x128xbf16, #tpu.memory_space<vmem>>, vector<36x128xbf16>
    %cst_26 = arith.constant dense<0.000000e+00> : vector<128x128xf32>
    %58 = tpu.matmul %56, %57, %cst_26 {dimension_numbers = #tpu.dot_dimension_numbers<[1], [0], [0], [1], [0, 0, 1, 1], [], []>} : vector<128x36xbf16>, vector<36x128xbf16>, vector<128x128xf32> -> vector<128x128xf32>
    %c0_27 = arith.constant 0 : index
    %c0_28 = arith.constant 0 : index
    %59 = vector.load %arg6[%c0_27, %c0_28] : memref<1x128xf32, #tpu.memory_space<vmem>>, vector<1x128xf32>
    %60 = vector.broadcast %59 : vector<1x128xf32> to vector<128x128xf32>
    %61 = arith.addf %58, %60 : vector<128x128xf32>
    %cst_29 = arith.constant 0.000000e+00 : f32
    %62 = vector.broadcast %cst_29 : f32 to vector<128x128xf32>
    %63 = arith.maximumf %61, %62 : vector<128x128xf32>
    %64 = arith.truncf %63 : vector<128x128xf32> to vector<128x128xbf16>
    %c0_30 = arith.constant 0 : index
    %c0_31 = arith.constant 0 : index
    %65 = vector.load %arg7[%c0_30, %c0_31] : memref<128x128xbf16, #tpu.memory_space<vmem>>, vector<128x128xbf16>
    %cst_32 = arith.constant dense<0.000000e+00> : vector<128x128xf32>
    %66 = tpu.matmul %64, %65, %cst_32 {dimension_numbers = #tpu.dot_dimension_numbers<[1], [0], [0], [1], [0, 0, 1, 1], [], []>} : vector<128x128xbf16>, vector<128x128xbf16>, vector<128x128xf32> -> vector<128x128xf32>
    %c0_33 = arith.constant 0 : index
    %c0_34 = arith.constant 0 : index
    %67 = vector.load %arg8[%c0_33, %c0_34] : memref<1x128xf32, #tpu.memory_space<vmem>>, vector<1x128xf32>
    %68 = vector.broadcast %67 : vector<1x128xf32> to vector<128x128xf32>
    %69 = arith.addf %66, %68 : vector<128x128xf32>
    %70 = vector.shape_cast %69 : vector<128x128xf32> to vector<8x16x128xf32>
    %71 = arith.truncf %70 : vector<8x16x128xf32> to vector<8x16x128xbf16>
    %c0_35 = arith.constant 0 : index
    %c0_36 = arith.constant 0 : index
    %c0_37 = arith.constant 0 : index
    %c0_38 = arith.constant 0 : index
    %72 = vector.load %arg9[%c0_35, %c0_36, %c0_37, %c0_38] : memref<1x8x16x128xbf16, #tpu.memory_space<vmem>>, vector<1x8x16x128xbf16>
    %73 = vector.shape_cast %72 : vector<1x8x16x128xbf16> to vector<8x16x128xbf16>
    %74 = vector.shape_cast %71 : vector<8x16x128xbf16> to vector<1x8x16x128xbf16>
    tpu.vector_store %arg9[%c0_35, %c0_36, %c0_37, %c0_38], %74 {strides = array<i32>} : memref<1x8x16x128xbf16, #tpu.memory_space<vmem>>, vector<1x8x16x128xbf16>,
    return
  }
  func.func @transform_0(%arg0: i32, %arg1: i32) -> (i32, i32, i32, i32) {
    %c2_i32 = arith.constant 2 : i32
    %0 = arith.muli %arg0, %c2_i32 : i32
    %1 = arith.addi %0, %arg1 : i32
    %c0_i32 = arith.constant 0 : i32
    %c0_i32_0 = arith.constant 0 : i32
    %c0_i32_1 = arith.constant 0 : i32
    %c0_i32_2 = arith.constant 0 : i32
    return %1, %c0_i32, %c0_i32_0, %c0_i32_1 : i32, i32, i32, i32
  }
  func.func @transform_1(%arg0: i32, %arg1: i32) -> (i32, i32, i32) {
    %c0_i32 = arith.constant 0 : i32
    %c0_i32_0 = arith.constant 0 : i32
    %c0_i32_1 = arith.constant 0 : i32
    %c0_i32_2 = arith.constant 0 : i32
    return %c0_i32, %c0_i32_0, %c0_i32_1 : i32, i32, i32
  }
  func.func @transform_2(%arg0: i32, %arg1: i32) -> (i32, i32, i32) {
    %c0_i32 = arith.constant 0 : i32
    %c0_i32_0 = arith.constant 0 : i32
    %c0_i32_1 = arith.constant 0 : i32
    %c0_i32_2 = arith.constant 0 : i32
    return %c0_i32, %c0_i32_0, %c0_i32_1 : i32, i32, i32
  }
  func.func @transform_3(%arg0: i32, %arg1: i32) -> (i32, i32) {
    %c0_i32 = arith.constant 0 : i32
    %c0_i32_0 = arith.constant 0 : i32
    %c0_i32_1 = arith.constant 0 : i32
    return %c0_i32, %c0_i32_0 : i32, i32
  }
  func.func @transform_4(%arg0: i32, %arg1: i32) -> (i32, i32) {
    %c0_i32 = arith.constant 0 : i32
    %c0_i32_0 = arith.constant 0 : i32
    %c0_i32_1 = arith.constant 0 : i32
    return %c0_i32, %c0_i32_0 : i32, i32
  }
  func.func @transform_5(%arg0: i32, %arg1: i32) -> (i32, i32) {
    %c0_i32 = arith.constant 0 : i32
    %c0_i32_0 = arith.constant 0 : i32
    %c0_i32_1 = arith.constant 0 : i32
    return %c0_i32, %c0_i32_0 : i32, i32
  }
  func.func @transform_6(%arg0: i32, %arg1: i32) -> (i32, i32) {
    %c0_i32 = arith.constant 0 : i32
    %c0_i32_0 = arith.constant 0 : i32
    %c0_i32_1 = arith.constant 0 : i32
    return %c0_i32, %c0_i32_0 : i32, i32
  }
  func.func @transform_7(%arg0: i32, %arg1: i32) -> (i32, i32, i32, i32) {
    %c0_i32 = arith.constant 0 : i32
    %c0_i32_0 = arith.constant 0 : i32
    %c0_i32_1 = arith.constant 0 : i32
    return %arg0, %arg1, %c0_i32, %c0_i32_0 : i32, i32, i32, i32
  }
}

</mosaic_0001>

<bundles_post_ra>
// kernel: tpu_custom_call.1
= control target key start
LH: loop header
LB: loop body
LE: loop exit
PB: predicated region body
PF: predicated region fallthrough
CT: control target
= control target key end

     0   :  { %s3557_s0 = inlined_call_operand.vmem [shape: f32[4,10,24,4], index: 0, kind: input, shape index: {}]   ;;  %s3558_s1 = inlined_call_operand.vmem [shape: f32[1,1,4], index: 1, kind: input, shape index: {}]   ;;  %s3559_s2 = inlined_call_operand.vmem [shape: f32[1,1,4], index: 2, kind: input, shape index: {}]   ;;  %s3560_s3 = inlined_call_operand.vmem [shape: bf16[36,128], index: 3, kind: input, shape index: {}]   ;;  %s3561_s4 = inlined_call_operand.vmem [shape: f32[1,128], index: 4, kind: input, shape index: {}]   ;;  %s3562_s5 = inlined_call_operand.vmem [shape: bf16[128,128], index: 5, kind: input, shape index: {}]   ;;  %s3563_s6 = inlined_call_operand.vmem [shape: f32[1,128], index: 6, kind: input, shape index: {}]   ;;  %s3564_s7 = inlined_call_operand.hbm [shape: bf16[2,16,16,128], index: 7, kind: output, shape index: {}]  }
   0x1   :  { %3582 = sst [smem:[#allocation6_spill]] %s3557_s0 }
   0x2   :  { %12 = vsyncpa [#allocation4], 0 }
   0x3   :  { %14 = vsyncpa [#allocation4 + $0x1], 0  ;;  %s2332_s24 = smov 0   ;;  %s2334_s25 = smov 0  }
   0x4   :  { %s2336_s26 = smov 0   ;;  %s2338_s27 = smov 0  }
   0x5   :  { %s2340_s28 = smov 0   ;;  %s2342_s29 = smov 0  }
   0x6   :  { %s2344_s30 = smov 0   ;;  %s2346_s8 = smov 0  }
   0x7 LB: > { %s1915_s9 = sadd.s32 4294967295, %s2281_s8   ;;  %s1916_s10 = sadd.s32 4294967294, %s2281_s8   ;;  %s2281_s8 = sphi %s2346_s8, %s20_s8   ;;  %s2277_s30 = sphi %s2344_s30, %s3650_s30   ;;  %s2273_s29 = sphi %s2342_s29, %s3649_s29   ;;  %s2269_s28 = sphi %s2340_s28, %s3648_s28   ;;  %s2265_s27 = sphi %s2338_s27, %s3647_s27   ;;  %s2261_s26 = sphi %s2336_s26, %s3646_s26   ;;  %s2257_s25 = sphi %s2334_s25, %s3645_s25   ;;  %s2253_s24 = sphi %s2332_s24, %s3644_s24  }
   0x8   : > { %s29_s11 = sadd.s32 1, %s2273_s29  ;;  %s32_s12 = sadd.s32 1, %s2277_s30 }
   0x9   : > { %p30_p0 = scmp.ge.s32.totalorder %s29_s11, 2  ;;  %p207_p1 = scmp.ne.s32.totalorder %s2261_s26, %s2257_s25 }
   0xa   : > { %p208_p2 = scmp.eq.s32.totalorder %s1915_s9, 3  ;;  %p213_p5 = scmp.ne.s32.totalorder %s2257_s25, %s2253_s24 }
   0xb   : > { %s3652_s11 = smov (%p30_p0, %s29_s11), 0  ;;  %s3654_s12 = smov (!%p30_p0, %s32_s12), %s2277_s30 }
   0xc   : > { %s193_s13 = ssub.s32 %s2273_s29, %s3652_s11  ;;  %p2383_p3 = por %p208_p2, %p207_p1 }
   0xd   : > { %p34_p4 = scmp.ge.s32.totalorder %s3654_s12, 2  ;;  %p214_p6 = scmp.eq.s32.totalorder %s1916_s10, 3 }
   0xe   : > { %p1921_p7 = scmp.ge.s32.totalorder %s2281_s8, 1  ;;  %p262_p9 = scmp.lt.s32.totalorder %s2281_s8, 5 }
   0xf   : > { %s3656_s12 = smov (%p34_p4, %s3654_s12), 0  ;;  %p2392_p8 = por %p214_p6, %p213_p5 }
  0x10   : > { %s192_s16 = ssub.s32 %s2277_s30, %s3656_s12  ;;  %s197_s17 = sadd.s32 1, %s2261_s26 }
  0x11   : > { %s194_s18 = sor.u32 %s193_s13, %s192_s16  ;;  %p263_p10 = pnand %p1921_p7, %p262_p9 }
  0x12   : > { %p195_p11 = scmp.eq.s32.totalorder %s194_s18, 0  ;;  %s1923_s20 = sshll.u32 (!%p263_p10), %s2269_s28, 1 }
  0x13   : > { %266 = sbr.rel (%p263_p10) target bundleno = 797 (0x31d), region = 48  ;;  %s1925_s21 = sshll.u32 (!%p263_p10), %s2265_s27, 3 }
  0x14   : > { %s2401_s19 = scalar_select %p195_p11, %s2261_s26, %s197_s17  }
  0x15   : > { %s297_s22 = sadd.s32 (!%p263_p10), %s2265_s27, %s1923_s20  ;;  %s3585_s0 = sld [smem:[#allocation6_spill]] (!%p263_p10) }
  0x16   : > { %p298_p12 = scmp.lt.s32.totalorder (!%p263_p10), %s297_s22, 3  ;;  %s3579_s9 = smov (!%p263_p10), 8  }
  0x17   : > { %s3581_s10 = smov (!%p263_p10), 4   ;;  %s3574_s13 = smov (!%p263_p10), 16  }
  0x18   : > { %v446_v0 = vlaneseq  ;;  %v2406_v1 = vstv %s1925_s21  ;;  %s3658_s22 = smov (!%p298_p12, %s297_s22), 3  ;;  %v2415_v5 = vld [vmem:[%s3558_s1] ss:$0 sm:$0xff]  ;;  %vm907_vm11 = vcmask 1042432   ;;  %vm908_vm15 = vcmask 1046532   ;;  %s3565_s21 = smov 24  }
  0x19   : > { %v438_v2 = vadd.s32 2, %v2406_v1  ;;  %v437_v4 = vadd.s32 1, %v2406_v1  ;;  %s2100_s23 = smul.u32 240, %s3658_s22  ;;  %vm450_vm2 = vcmp.ge.s32.totalorder %v2406_v1, 1  ;;  %vm460_vm3 = vcmp.le.s32.totalorder %v2406_v1, 16  ;;  %s3576_s22 = smov 12  }
  0x1a   : > { %v2409_v3 = vshrl.u32 %v446_v0, 7  ;;  %v2430_v7 = vld [vmem:[%s3559_s2] ss:$0 sm:$0xff]  ;;  %vm2446_vm8 = vmand %vm450_vm2, %vm460_vm3  ;;  %s3569_s16 = smov 28   ;;  %s3567_s18 = smov 32  }
  0x1b   : > { %vm452_vm0 = vcmp.ge.s32.totalorder %v438_v2, 1  ;;  %vm462_vm1 = vcmp.le.s32.totalorder %v438_v2, 16  ;;  %s2425_s17 = scalar_lea.vmem %s3585_s0, %s2100_s23  ;;  %vm451_vm5 = vcmp.ge.s32.totalorder %v437_v4, 1  ;;  %vm461_vm6 = vcmp.le.s32.totalorder %v437_v4, 16  ;;  %vm2521_vm3 = vmor %vm907_vm11, %vm908_vm15  ;;  %s3572_s23 = smov 20  }
  0x1c   : > { %v2418_v6 = vadd.s32 16, %v2409_v3  ;;  %vm2432_vm4 = vmand %vm452_vm0, %vm462_vm1  ;;  %v313_v9 = vld [vmem:[%s2425_s17 + $0x30] sm:$0xff]  ;;  %v314_v10 = vld [vmem:[%s2425_s17 + $0x38] sm:$0xff]  ;;  %vm480_vm7 = vcmp.ge.s32.totalorder %v2409_v3, 1  ;;  %vm623_vm1 = vsmask.f32 3328 }
  0x1d   : > { %v311_v11 = vld [vmem:[%s2425_s17 + $0x20] sm:$0xff]  ;;  %v347_v12 = vmul.f32 %v2415_v5, %v313_v9  ;;  %v312_v13 = vld [vmem:[%s2425_s17 + $0x28] sm:$0xff]  ;;  %v310_v15 = vld [vmem:[%s2425_s17 + $0x18] sm:$0xff]  ;;  %v348_v22 = vmul.f32 %v2415_v5, %v314_v10  ;;  %s3622_s0 = smov 8  }
  0x1e   : > { %v345_v14 = vmul.f32 %v2415_v5, %v311_v11  ;;  %v346_v17 = vmul.f32 %v2415_v5, %v312_v13  ;;  %vm2451_vm9 = vmand %vm451_vm5, %vm461_vm6  ;;  %vm515_vm10 = vcmp.le.s32.totalorder %v2418_v6, 16  ;;  %v344_v19 = vmul.f32 %v2415_v5, %v310_v15  ;;  %v307_v20 = vld [vmem:[%s2425_s17] sm:$0xff]  ;;  %v308_v21 = vld [vmem:[%s2425_s17 + $0x8] sm:$0xff] }
  0x1f   : > { %v381_v23 = vadd.f32 %v2430_v7, %v347_v12  ;;  %vm2465_vm12 = vmand %vm2432_vm4, %vm480_vm7  ;;  %v341_v26 = vmul.f32 %v2415_v5, %v307_v20  ;;  %v309_v27 = vld [vmem:[%s2425_s17 + $0x10] sm:$0xff]  ;;  %v342_v31 = vmul.f32 %v2415_v5, %v308_v21  ;;  %v382_v40 = vadd.f32 %v2430_v7, %v348_v22  ;;  %v315_v21 = vld [vmem:[%s2425_s17 + $0x40] sm:$0xff] }
  0x20   : > { %v379_v25 = vadd.f32 %v2430_v7, %v345_v14  ;;  %v380_v28 = vadd.f32 %v2430_v7, %v346_v17  ;;  %vm2477_vm13 = vmand %vm2451_vm9, %vm480_vm7  ;;  %v378_v30 = vadd.f32 %v2430_v7, %v344_v19  ;;  %v343_v32 = vmul.f32 %v2415_v5, %v309_v27 }
  0x21   : > { %v411_v33 = vmax.f32 %v381_v23, 0.0  ;;  %vm521_vm14 = vmand %vm2451_vm9, %vm515_vm10  ;;  %v375_v35 = vadd.f32 %v2430_v7, %v341_v26  ;;  %v376_v38 = vadd.f32 %v2430_v7, %v342_v31  ;;  %v412_v55 = vmax.f32 %v382_v40, 0.0 }
  0x22   : > { %v409_v34 = vmax.f32 %v379_v25, 0.0  ;;  %v410_v36 = vmax.f32 %v380_v28, 0.0  ;;  %v408_v37 = vmax.f32 %v378_v30, 0.0  ;;  %vm483_vm0 = vmand %vm2446_vm8, %vm480_vm7  ;;  %v377_v39 = vadd.f32 %v2430_v7, %v343_v32 }
  0x23   : > { %v552_v41 = vsel %vm2465_vm12, %v411_v33, 0.0  ;;  %v405_v43 = vmax.f32 %v375_v35, 0.0  ;;  %v406_v49 = vmax.f32 %v376_v38, 0.0  ;;  %vm518_vm2 = vmand %vm2446_vm8, %vm515_vm10  ;;  %vm624_vm5 = vsmask.f32 7440 }
  0x24   : > { %v550_v42 = vsel %vm2451_vm9, %v409_v34, 0.0  ;;  %v2500_v44 = vpack.c.bf16 %v552_v41, %v552_v41  ;;  %v551_v45 = vsel %vm521_vm14, %v410_v36, 0.0  ;;  %v549_v48 = vsel %vm2477_vm13, %v408_v37, 0.0  ;;  %vm2558_vm6 = vmor %vm623_vm1, %vm624_vm5 }
  0x25   : > { %v2502_v46 = vpack.c.bf16 %v550_v42, %v550_v42  ;;  %v2504_v47 = vpack.c.bf16 %v551_v45, %v551_v45  ;;  %v546_v50 = vsel %vm483_vm0, %v405_v43, 0.0  ;;  %v2511_v52 = vpack.c.bf16 %v549_v48, %v549_v48 }
  0x26   : > { %1262 = vrot.lane.b32.xlu1 %v2500_v44, %s3565_s21  ;;  %v2513_v53 = vpack.c.bf16 %v546_v50, %v546_v50  ;;  %v407_v54 = vmax.f32 %v377_v39, 0.0  ;;  %v547_v58 = vsel %vm2446_vm8, %v406_v49, 0.0  ;;  %v553_v13 = vsel %vm2432_vm4, %v412_v55, 0.0  ;;  %vm524_vm8 = vmand %vm2432_vm4, %vm515_vm10 }
  0x27   : > { %v919_v51 = vrot.slane %v2502_v46, 5  ;;  %v922_v57 = vrot.slane %v2504_v47, 5  ;;  %v2530_v60 = vpack.c.bf16 %v547_v58, %v547_v58  ;;  %1033 = vrot.lane.b32.xlu2 %v2511_v52, %s3576_s22  ;;  %v660_v2 = vshll.u32 %v2502_v46, 16 }
  0x28   : > { %v1926_v61 = vrot.slane %v2513_v53, 9  ;;  %v627_v62 = vshrl.u32 %v2513_v53, 16  ;;  %v630_v63 = vshll.u32 %v2513_v53, 16  ;;  %v548_v0 = vsel %vm518_vm2, %v407_v54, 0.0 }
  0x29   : > { %v921_v59 = vrot.slane %v919_v51, 4  ;;  %v664_v4 = vshrl.u32 %v2502_v46, 16  ;;  %v912_v10 = vrot.slane %v2530_v60, 5  ;;  %v636_v12 = vshll.u32 %v2530_v60, 16 }
  0x2a   : > { %v629_v11 = vrot.slane %v627_v62, 4  ;;  %v632_v14 = vrot.slane %v630_v63, 5  ;;  %v578_v15 = vpack.c.bf16 %v548_v0, %v548_v0  ;;  %v640_v16 = vshrl.u32 %v2530_v60, 16 }
  0x2b   : > { %v2541_v9 = vsel %vm2521_vm3, %v921_v59, %v922_v57  ;;  %v913_v17 = vsel %vm2521_vm3, %v1926_v61, %v912_v10  ;;  %v638_v19 = vrot.slane %v636_v12, 5  ;;  %v2553_v22 = vpack.c.bf16 %v553_v13, %v553_v13 }
  0x2c   : > { %1197 = vrot.lane.b32.xlu0 %v2541_v9, %s3572_s23  ;;  %v633_v18 = vor.u32 %v632_v14, %v629_v11  ;;  %v642_v20 = vrot.slane %v640_v16, 4  ;;  %v662_v24 = vrot.slane %v660_v2, 5  ;;  %v666_v25 = vrot.slane %v664_v4, 4 }
  0x2d   : > { %v914_v27 = vrot.slane %v912_v10, 4  ;;  %v915_v28 = vrot.slane %v578_v15, 5  ;;  %v646_v29 = vshll.u32 %v578_v15, 16  ;;  %v651_v31 = vshrl.u32 %v2511_v52, 16 }
  0x2e   : > { %966 = vrot.lane.b32.xlu1 %v913_v17, %s3579_s9  ;;  %v634_v26 = vrot.slane %v633_v18, 4  ;;  %v643_v30 = vor.u32 %v642_v20, %v638_v19  ;;  %v654_v32 = vshll.u32 %v2511_v52, 16  ;;  %v349_v33 = vmul.f32 %v2415_v5, %v315_v21  ;;  %v316_v21 = vld [vmem:[%s2425_s17 + $0x48] sm:$0xff] }
  0x2f   : > { %1035 = vrot.lane.b32.xlu2 %v2502_v46, %s3576_s22  ;;  %v667_v35 = vor.u32 %v666_v25, %v662_v24  ;;  %v670_v36 = vshll.u32 %v2504_v47, 16  ;;  %v916_v38 = vsel %vm2521_vm3, %v914_v27, %v915_v28  ;;  %v648_v39 = vrot.slane %v646_v29, 5  ;;  %v317_v27 = vld [vmem:[%s2425_s17 + $0x50] sm:$0xff] }
  0x30   : > { %v639_v34 = vsel %vm2558_vm6, %v634_v26, %v638_v19  ;;  %v383_v37 = vadd.f32 %v2430_v7, %v349_v33  ;;  %v684_v40 = vshll.u32 %v2553_v22, 16  ;;  %v688_v41 = vshrl.u32 %v2553_v22, 16 }
  0x31   : > { %v644_v42 = vrot.slane %v643_v30, 4  ;;  %v653_v43 = vrot.slane %v651_v31, 4  ;;  %v656_v45 = vrot.slane %v654_v32, 5  ;;  %v1927_v48 = vrot.slane %v2511_v52, 9 }
  0x32   : > { %v413_v47 = vmax.f32 %v383_v37, 0.0  ;;  %v668_v49 = vrot.slane %v667_v35, 4  ;;  %v672_v50 = vrot.slane %v670_v36, 5  ;;  %v686_v57 = vrot.slane %v684_v40, 5  ;;  %v318_v36 = vld [vmem:[%s2425_s17 + $0x58] sm:$0xff] }
  0x33   : > { %v690_v58 = vrot.slane %v688_v41, 4  ;;  %v920_v8 = vsel %vm2521_vm3, %v1927_v48, %v919_v51  ;;  %v649_v59 = vsel %vm2558_vm6, %v644_v42, %v648_v39  ;;  %v657_v61 = vor.u32 %v656_v45, %v653_v43 }
  0x34   : > { %818 = vrot.lane.b32.xlu0 %v639_v34, %s3581_s10  ;;  %v554_v54 = vsel %vm524_vm8, %v413_v47, 0.0  ;;  %v675_v62 = vshrl.u32 %v2500_v44, 16  ;;  %v678_v63 = vshll.u32 %v2500_v44, 16  ;;  %v673_v0 = vsel %vm2558_vm6, %v668_v49, %v672_v50 }
  0x35   : > { %v584_v55 = vpack.c.bf16 %v554_v54, %v554_v54  ;;  %v691_v2 = vor.u32 %v690_v58, %v686_v57  ;;  %v658_v10 = vrot.slane %v657_v61, 4  ;;  %v1928_v16 = vrot.slane %v2500_v44, 9 }
  0x36   : > { %968 = vrot.lane.b32.xlu1 %v916_v38, %s3579_s9  ;;  %v677_v51 = vrot.slane %v675_v62, 4  ;;  %v680_v11 = vrot.slane %v678_v63, 5  ;;  %v926_v18 = vrot.slane %v2553_v22, 5  ;;  %v350_v26 = vmul.f32 %v2415_v5, %v316_v21 }
  0x37   : > { %1195 = vrot.lane.b32.xlu2 %v920_v8, %s3572_s23  ;;  %v694_v4 = vshll.u32 %v584_v55, 16  ;;  %v692_v12 = vrot.slane %v691_v2, 4  ;;  %v663_v14 = vsel %vm2558_vm6, %v658_v10, %v662_v24  ;;  %v439_v24 = vadd.s32 3, %v2406_v1 }
  0x38   : > { %v681_v15 = vor.u32 %v680_v11, %v677_v51  ;;  %v2608_v20 = vsel %vm2521_vm3, %v1928_v16, %v926_v18  ;;  %v928_v28 = vrot.slane %v926_v18, 4  ;;  %v929_v29 = vrot.slane %v584_v55, 5  ;;  %v320_v18 = vld [vmem:[%s2425_s17 + $0x68] sm:$0xff] }
  0x39   : > { %v696_v13 = vrot.slane %v694_v4, 5  ;;  %vm453_vm4 = vcmp.ge.s32.totalorder %v439_v24, 1  ;;  %vm463_vm9 = vcmp.le.s32.totalorder %v439_v24, 16  ;;  %v384_v30 = vadd.f32 %v2430_v7, %v350_v26 }
  0x3a   : > { %v682_v19 = vrot.slane %v681_v15, 4  ;;  %v351_v31 = vmul.f32 %v2415_v5, %v317_v27  ;;  %vm2627_vm11 = vmand %vm453_vm4, %vm463_vm9  ;;  %v2633_v33 = vsel %vm2521_vm3, %v928_v28, %v929_v29  ;;  %v352_v39 = vmul.f32 %v2415_v5, %v318_v36  ;;  %v319_v15 = vld [vmem:[%s2425_s17 + $0x60] sm:$0xff] }
  0x3b   : > { %v2603_v17 = vsel %vm2558_vm6, %v692_v12, %v696_v13  ;;  %v414_v34 = vmax.f32 %v384_v30, 0.0  ;;  %vm492_vm12 = vmand %vm2627_vm11, %vm480_vm7  ;;  %v353_v21 = vmul.f32 %v2415_v5, %v319_v15  ;;  %v354_v24 = vmul.f32 %v2415_v5, %v320_v18  ;;  %v321_v30 = vld [vmem:[%s2425_s17 + $0x70] sm:$0xff] }
  0x3c   : > { %820 = vrot.lane.b32.xlu0 %v649_v59, %s3581_s10  ;;  %v2616_v25 = vsel %vm2558_vm6, %v682_v19, %v686_v57  ;;  %v385_v35 = vadd.f32 %v2430_v7, %v351_v31  ;;  %v386_v42 = vadd.f32 %v2430_v7, %v352_v39  ;;  %vm527_vm13 = vmand %vm2627_vm11, %vm515_vm10  ;;  %v440_v19 = vadd.s32 4, %v2406_v1 }
  0x3d   : > { %v555_v37 = vsel %vm492_vm12, %v414_v34, 0.0  ;;  %v387_v26 = vadd.f32 %v2430_v7, %v353_v21  ;;  %v388_v27 = vadd.f32 %v2430_v7, %v354_v24  ;;  %vm606_vm2 = vcmask 27648   ;;  %v1509_v24 = vld [vmem:[%s3560_s3 + $0x10] sm:$0x3] }
  0x3e   : > { %1124 = vrot.lane.b32.xlu1 %v673_v0, %s3574_s13  ;;  %v415_v38 = vmax.f32 %v385_v35, 0.0  ;;  %v2647_v40 = vpack.c.bf16 %v555_v37, %v555_v37  ;;  %v416_v47 = vmax.f32 %v386_v42, 0.0  ;;  %vm454_vm14 = vcmp.ge.s32.totalorder %v440_v19, 1  ;;  %607 = vst.msk [vmem:[#allocation2] sm:$0xf] %vm606_vm2, %v2513_v53 }
  0x3f   : > { %1264 = vrot.lane.b32.xlu2 %v2553_v22, %s3565_s21  ;;  %vm464_vm15 = vcmp.le.s32.totalorder %v440_v19, 16  ;;  %v417_v28 = vmax.f32 %v387_v26, 0.0  ;;  %v355_v31 = vmul.f32 %v2415_v5, %v321_v30  ;;  %608 = vst.msk [vmem:[#allocation2 + $0x4] sm:$0xf] %vm606_vm2, %v2530_v60  ;;  %vm1594_vm12 = vcmask 1041408  }
  0x40   : > { %v556_v41 = vsel %vm2627_vm11, %v415_v38, 0.0  ;;  %v699_v43 = vshrl.u32 %v2647_v40, 16  ;;  %v702_v45 = vshll.u32 %v2647_v40, 16  ;;  %v557_v54 = vsel %vm527_vm13, %v416_v47, 0.0  ;;  %vm2716_vm0 = vmand %vm454_vm14, %vm464_vm15  ;;  %609 = vst.msk [vmem:[#allocation2 + $0x8] sm:$0xf] %vm606_vm2, %v2511_v52 }
  0x41   : > { %vm495_vm1 = vmand %vm2716_vm0, %vm480_vm7  ;;  %610 = vst.msk [vmem:[#allocation2 + $0xc] sm:$0xf] %vm606_vm2, %v2502_v46  ;;  %v389_v60 = vadd.f32 %v2430_v7, %v355_v31  ;;  %vm3578_vm13 = vcmask 60448   ;;  %vm1014_vm14 = vcmask 93248   ;;  %vm1081_vm15 = vcmask 126048  }
  0x42   : > { %v701_v48 = vrot.slane %v699_v43, 4  ;;  %v704_v49 = vrot.slane %v702_v45, 5  ;;  %v558_v32 = vsel %vm495_vm1, %v417_v28, 0.0  ;;  %611 = vst.msk [vmem:[#allocation2 + $0x10] sm:$0xf] %vm606_vm2, %v2500_v44  ;;  %vm530_vm5 = vmand %vm2716_vm0, %vm515_vm10  ;;  %vm1243_vm1 = vcmask 191648  }
  0x43   : > { %v2748_v53 = vpack.c.bf16 %v558_v32, %v558_v32  ;;  %612 = vst.msk [vmem:[#allocation2 + $0x14] sm:$0xf] %vm606_vm2, %v2553_v22 }
  0x44   : > { %1122 = vrot.lane.b32.xlu0 %v663_v14, %s3574_s13  ;;  %v705_v55 = vor.u32 %v704_v49, %v701_v48  ;;  %613 = vst.msk [vmem:[#allocation2 + $0x18] sm:$0xf] %vm606_vm2, %v2647_v40 }
  0x45   : > { %615 = vst.msk [vmem:[#allocation2 + $0x20] sm:$0xf] %vm606_vm2, %v2748_v53  ;;  %v1930_v47 = vrot.slane %v2748_v53, 9 }
  0x46   : > { %1353 = vrot.lane.b32.xlu1 %v2603_v17, %s3569_s16  ;;  %v706_v61 = vrot.slane %v705_v55, 4  ;;  %v322_v55 = vld [vmem:[%s2425_s17 + $0x78] sm:$0xff] }
  0x47   : > { %1424 = vrot.lane.b32.xlu2 %v2608_v20, %s3567_s18 }
  0x4c   : > { %1351 = vrot.lane.b32.xlu0 %v2616_v25, %s3569_s16 }
  0x4e   : > { %822 = vrot.lane.b32.xlu1 %v663_v14, %s3581_s10  ;;  %v1929_v14 = vrot.slane %v2647_v40, 9 }
  0x4f   : > { %824 = vrot.lane.b32.xlu2 %v673_v0, %s3581_s10 }
  0x54   : > { %1426 = vrot.lane.b32.xlu0 %v2633_v33, %s3567_s18 }
  0x56   : > { %972 = vrot.lane.b32.xlu1 %v2541_v9, %s3579_s9  ;;  %v2657_v9 = vpack.c.bf16 %v556_v41, %v556_v41 }
  0x57   : > { %1037 = vrot.lane.b32.xlu2 %v2500_v44, %s3576_s22  ;;  %v723_v44 = vshrl.u32 %v2748_v53, 16 }
  0x58   : > { %v708_v50 = vshll.u32 %v2657_v9, 16  ;;  %v712_v57 = vshrl.u32 %v2657_v9, 16  ;;  %v933_v10 = vrot.slane %v2657_v9, 5  ;;  %614 = vst.msk [vmem:[#allocation2 + $0x1c] sm:$0xf] %vm606_vm2, %v2657_v9 }
  0x59   : > { %v725_v34 = vrot.slane %v723_v44, 4 }
  0x5a   : > { %v710_v58 = vrot.slane %v708_v50, 5  ;;  %v714_v59 = vrot.slane %v712_v57, 4  ;;  %v935_v11 = vrot.slane %v933_v10, 4  ;;  %v2702_v16 = vsel %vm2521_vm3, %v1929_v14, %v933_v10  ;;  %v323_v57 = vld [vmem:[%s2425_s17 + $0x80] sm:$0xff] }
  0x5c   : > { %970 = vrot.lane.b32.xlu0 %v920_v8, %s3579_s9  ;;  %v587_v8 = vpack.c.bf16 %v557_v54, %v557_v54  ;;  %v715_v62 = vor.u32 %v714_v59, %v710_v58  ;;  %v2679_v4 = vsel %vm2558_vm6, %v706_v61, %v710_v58  ;;  %v356_v59 = vmul.f32 %v2415_v5, %v322_v55 }
  0x5d   : > { %v357_v61 = vmul.f32 %v2415_v5, %v323_v57 }
  0x5e   : > { %1126 = vrot.lane.b32.xlu1 %v2616_v25, %s3574_s13  ;;  %v718_v63 = vshll.u32 %v587_v8, 16  ;;  %v716_v0 = vrot.slane %v715_v62, 4  ;;  %v936_v12 = vrot.slane %v587_v8, 5 }
  0x5f   : > { %1128 = vrot.lane.b32.xlu2 %v2603_v17, %s3574_s13  ;;  %v391_v10 = vadd.f32 %v2430_v7, %v357_v61  ;;  %v325_v61 = vld [vmem:[%s2425_s17 + $0x90] sm:$0xff] }
  0x60   : > { %v720_v2 = vrot.slane %v718_v63, 5  ;;  %v2694_v13 = vsel %vm2521_vm3, %v935_v11, %v936_v12  ;;  %v441_v63 = vadd.s32 5, %v2406_v1 }
  0x61   : > { %v421_v19 = vmax.f32 %v391_v10, 0.0  ;;  %v442_v10 = vadd.s32 6, %v2406_v1 }
  0x62   : > { %v2684_v51 = vsel %vm2558_vm6, %v716_v0, %v720_v2  ;;  %v390_v2 = vadd.f32 %v2430_v7, %v356_v59  ;;  %vm455_vm8 = vcmp.ge.s32.totalorder %v441_v63, 1  ;;  %vm465_vm4 = vcmp.le.s32.totalorder %v441_v63, 16 }
  0x63   : > { %vm2814_vm9 = vmand %vm455_vm8, %vm465_vm4  ;;  %vm1310_vm8 = vcmask 224448   ;;  %vm3571_vm4 = vcmask 257248   ;;  %v359_v63 = vmul.f32 %v2415_v5, %v325_v61 }
  0x64   : > { %1039 = vrot.lane.b32.xlu0 %v2553_v22, %s3576_s22  ;;  %v419_v22 = vmax.f32 %v389_v60, 0.0  ;;  %v420_v18 = vmax.f32 %v390_v2, 0.0  ;;  %vm498_vm11 = vmand %vm2814_vm9, %vm480_vm7 }
  0x66   : > { %1201 = vrot.lane.b32.xlu1 %v2633_v33, %s3572_s23  ;;  %v560_v39 = vsel %vm530_vm5, %v419_v22, 0.0  ;;  %v561_v26 = vsel %vm498_vm11, %v420_v18, 0.0  ;;  %v2032_v22 = vld [vmem:[%s3560_s3 + $0x8] sm:$0xff]  ;;  %vm533_vm5 = vmand %vm2814_vm9, %vm515_vm10  ;;  %vm456_vm11 = vcmp.ge.s32.totalorder %v442_v10, 1 }
  0x67   : > { %1266 = vrot.lane.b32.xlu2 %v2647_v40, %s3565_s21  ;;  %v590_v43 = vpack.c.bf16 %v560_v39, %v560_v39 }
  0x69   : > { %v742_v54 = vshll.u32 %v590_v43, 16  ;;  %v943_v8 = vrot.slane %v590_v43, 5 }
  0x6b   : > { %v744_v12 = vrot.slane %v742_v54, 5 }
  0x6c   : > { %1199 = vrot.lane.b32.xlu0 %v2608_v20, %s3572_s23 }
  0x6e   : > { %1355 = vrot.lane.b32.xlu1 %v2679_v4, %s3569_s16 }
  0x6f   : > { %1357 = vrot.lane.b32.xlu2 %v2684_v51, %s3569_s16 }
  0x74   : > { %1268 = vrot.lane.b32.xlu0 %v2657_v9, %s3565_s21 }
  0x76   : > { %1430 = vrot.lane.b32.xlu1 %v2694_v13, %s3567_s18 }
  0x77   : > { %826 = vrot.lane.b32.xlu2 %v2616_v25, %s3581_s10  ;;  %v1563_v25 = vunpack.c.l.b16 %v1509_v24 }
  0x79   : > { %v1566_v32 = vpack.c.b16 %v1563_v25, %v1563_v25 }
  0x7b   : > { %v1596_v60 = vsel %vm1594_vm12, %v1566_v32, 0  ;;  %vm466_vm12 = vcmp.le.s32.totalorder %v442_v10, 16 }
  0x7c   : > { %1428 = vrot.lane.b32.xlu0 %v2702_v16, %s3567_s18  ;;  %1603 = vmatpush.bf16.msra.mxu0 %v1596_v60 }
  0x7d   : > { %2089 = vmatpush.bf16.msra.mxu3 %v1596_v60 }
  0x7e   : > { %974 = vrot.lane.b32.xlu1 %v2608_v20, %s3579_s9  ;;  %v418_v20 = vmax.f32 %v388_v27, 0.0  ;;  %v562_v27 = vsel %vm2814_vm9, %v421_v19, 0.0  ;;  %vm1472_vm9 = vcmask 290048   ;;  %v326_v19 = vld [vmem:[%s2425_s17 + $0x98] sm:$0xff] }
  0x7f   : > { %976 = vrot.lane.b32.xlu2 %v2633_v33, %s3579_s9  ;;  %v726_v33 = vshll.u32 %v2748_v53, 16  ;;  %v2837_v31 = vpack.c.bf16 %v562_v27, %v562_v27 }
  0x80   : > { %1604 = vmatpush.bf16.msra.mxu0 %v2032_v22 }
  0x81   : > { %v2722_v29 = vpop.permute.xlu2 %1033  ;;  %v728_v35 = vrot.slane %v726_v33, 5  ;;  %618 = vst.msk [vmem:[#allocation2 + $0x2c] sm:$0xf] %vm606_vm2, %v2837_v31  ;;  %v324_v33 = vld [vmem:[%s2425_s17 + $0x88] sm:$0xff]  ;;  %2090 = vmatpush.bf16.msra.mxu3 %v2032_v22 }
  0x83   : > { %v729_v37 = vor.u32 %v728_v35, %v725_v34  ;;  %v358_v35 = vmul.f32 %v2415_v5, %v324_v33 }
  0x84   : > { %828 = vrot.lane.b32.xlu0 %v2603_v17, %s3581_s10  ;;  %v559_v17 = vsel %vm2716_vm0, %v418_v20, 0.0  ;;  %v2835_v20 = vpack.c.bf16 %v561_v26, %v561_v26  ;;  %vm1170_vm0 = vcmask 158848   ;;  %v360_v26 = vmul.f32 %v2415_v5, %v326_v19  ;;  %v329_v19 = vld [vmem:[%s2425_s17 + $0xb0] sm:$0xff] }
  0x85   : > { %v2759_v52 = vpack.c.bf16 %v559_v17, %v559_v17 }
  0x86   : > { %1043 = vrot.lane.b32.xlu1 %v2657_v9, %s3576_s22  ;;  %617 = vst.msk [vmem:[#allocation2 + $0x28] sm:$0xf] %vm606_vm2, %v2835_v20 }
  0x87   : > { %1130 = vrot.lane.b32.xlu2 %v2679_v4, %s3574_s13  ;;  %616 = vst.msk [vmem:[#allocation2 + $0x24] sm:$0xf] %vm606_vm2, %v2759_v52  ;;  %v732_v36 = vshll.u32 %v2759_v52, 16  ;;  %v736_v38 = vshrl.u32 %v2759_v52, 16  ;;  %v940_v48 = vrot.slane %v2759_v52, 5 }
  0x89   : > { %v2755_v46 = vpop.permute.xlu2 %1035  ;;  %v734_v42 = vrot.slane %v732_v36, 5  ;;  %v738_v45 = vrot.slane %v736_v38, 4  ;;  %v942_v58 = vrot.slane %v940_v48, 4  ;;  %v2806_v0 = vsel %vm2521_vm3, %v1930_v47, %v940_v48 }
  0x8a   : > { %v750_v47 = vshll.u32 %v2835_v20, 16 }
  0x8b   : > { %v739_v50 = vor.u32 %v738_v45, %v734_v42  ;;  %v2812_v15 = vsel %vm2521_vm3, %v942_v58, %v943_v8  ;;  %v747_v45 = vshrl.u32 %v2835_v20, 16 }
  0x8c   : > { %1041 = vrot.lane.b32.xlu0 %v2647_v40, %s3576_s22  ;;  %v730_v40 = vrot.slane %v729_v37, 4  ;;  %v392_v37 = vadd.f32 %v2430_v7, %v358_v35  ;;  %v752_v54 = vrot.slane %v750_v47, 5 }
  0x8d   : > { %v740_v11 = vrot.slane %v739_v50, 4 }
  0x8e   : > { %1203 = vrot.lane.b32.xlu1 %v2702_v16, %s3572_s23  ;;  %v2785_v9 = vsel %vm2558_vm6, %v730_v40, %v734_v42 }
  0x8f   : > { %1205 = vrot.lane.b32.xlu2 %v2694_v13, %s3572_s23  ;;  %v2831_v30 = vsel %vm2558_vm6, %v740_v11, %v744_v12  ;;  %v947_v12 = vrot.slane %v2837_v31, 5 }
  0x91   : > { %v2779_v41 = vpop.permute.xlu2 %1195  ;;  %v949_v35 = vrot.slane %v947_v12, 4 }
  0x94   : > { %1132 = vrot.lane.b32.xlu0 %v2684_v51, %s3574_s13 }
  0x96   : > { %1272 = vrot.lane.b32.xlu1 %v2759_v52, %s3565_s21 }
  0x97   : > { %1359 = vrot.lane.b32.xlu2 %v2785_v9, %s3569_s16 }
  0x98   : > { %v2791_v49 = vpop.permute.xlu1 %1262 }
  0x99   : > { %v2799_v62 = vpop.permute.xlu2 %1264 }
  0x9c   : > { %1270 = vrot.lane.b32.xlu0 %v2748_v53, %s3565_s21  ;;  %s3610_s21 = smov 32  }
  0x9e   : > { %v1198_v14 = vpop.permute.xlu0 %1197  ;;  %1432 = vrot.lane.b32.xlu1 %v2806_v0, %s3567_s18 }
  0x9f   : > { %1434 = vrot.lane.b32.xlu2 %v2812_v15, %s3567_s18  ;;  %s3609_s18 = smov 28  }
  0xa0   : > { %v967_v28 = vpop.permute.xlu1 %966 }
  0xa1   : > { %v2839_v17 = vpop.permute.xlu2 %1424 }
  0xa4   : > { %1361 = vrot.lane.b32.xlu0 %v2831_v30, %s3569_s16  ;;  %s3606_s16 = smov 24  }
  0xa6   : > { %v819_v44 = vpop.permute.xlu0 %818  ;;  %832 = vrot.lane.b32.xlu1 %v2684_v51, %s3581_s10  ;;  %v2031_v51 = vld [vmem:[%s3560_s3] sm:$0xff] }
  0xa7   : > { %867 = vst.msk [vmem:[#allocation2] sm:$0xf] %vm3578_vm13, %v819_v44  ;;  %978 = vrot.lane.b32.xlu2 %v2702_v16, %s3579_s9  ;;  %1605 = vmatpush.bf16.msra.mxu0 %v2031_v51 }
  0xa8   : > { %1015 = vst.msk [vmem:[#allocation2] sm:$0xf] %vm1014_vm14, %v967_v28  ;;  %v969_v34 = vpop.permute.xlu1 %968  ;;  %2091 = vmatpush.bf16.msra.mxu3 %v2031_v51  ;;  %v394_v28 = vadd.f32 %v2430_v7, %v360_v26 }
  0xa9   : > { %1082 = vst.msk [vmem:[#allocation2] sm:$0xf] %vm1081_vm15, %v2722_v29  ;;  %v825_v36 = vpop.permute.xlu2 %824 }
  0xaa   : > { %870 = vst.msk [vmem:[#allocation2 + $0xc] sm:$0xf] %vm3578_vm13, %v825_v36  ;;  %v424_v33 = vmax.f32 %v394_v28, 0.0 }
  0xac   : > { %830 = vrot.lane.b32.xlu0 %v2679_v4, %s3581_s10  ;;  %v422_v4 = vmax.f32 %v392_v37, 0.0 }
  0xae   : > { %v821_v29 = vpop.permute.xlu0 %820  ;;  %1045 = vrot.lane.b32.xlu1 %v2748_v53, %s3576_s22  ;;  %v563_v38 = vsel %vm533_vm5, %v422_v4, 0.0  ;;  %vm2936_vm5 = vmand %vm456_vm11, %vm466_vm12  ;;  %vm3611_vm12 = vcmask 257248  }
  0xaf   : > { %868 = vst.msk [vmem:[#allocation2 + $0x4] sm:$0xf] %vm3578_vm13, %v821_v29  ;;  %1047 = vrot.lane.b32.xlu2 %v2759_v52, %s3576_s22  ;;  %v760_v52 = vshrl.u32 %v2837_v31, 16  ;;  %v2894_v40 = vpack.c.bf16 %v563_v38, %v563_v38  ;;  %vm536_vm11 = vmand %vm2936_vm5, %vm515_vm10 }
  0xb0   : > { %1016 = vst.msk [vmem:[#allocation2 + $0x4] sm:$0xf] %vm1014_vm14, %v969_v34  ;;  %v1125_v16 = vpop.permute.xlu1 %1124  ;;  %v565_v34 = vsel %vm2936_vm5, %v424_v33, 0.0 }
  0xb1   : > { %1083 = vst.msk [vmem:[#allocation2 + $0x4] sm:$0xf] %vm1081_vm15, %v2755_v46  ;;  %v2881_v53 = vpop.permute.xlu2 %1037  ;;  %v756_v46 = vshll.u32 %v2837_v31, 16  ;;  %v762_v42 = vrot.slane %v760_v52, 4  ;;  %v766_v50 = vshll.u32 %v2894_v40, 16  ;;  %v950_v36 = vrot.slane %v2894_v40, 5 }
  0xb2   : > { %1172 = vst.msk [vmem:[#allocation2 + $0x4] sm:$0xf] %vm1170_vm0, %v1125_v16  ;;  %v2967_v29 = vpack.c.bf16 %v565_v34, %v565_v34 }
  0xb3   : > { %1245 = vst.msk [vmem:[#allocation2 + $0x4] sm:$0xf] %vm1243_vm1, %v1198_v14  ;;  %v768_v58 = vrot.slane %v766_v50, 5  ;;  %v393_v14 = vadd.f32 %v2430_v7, %v359_v63  ;;  %v2974_v16 = vsel %vm2521_vm3, %v949_v35, %v950_v36 }
  0xb4   : > { %980 = vrot.lane.b32.xlu0 %v2694_v13, %s3579_s9  ;;  %1312 = vst.msk [vmem:[#allocation2 + $0x4] sm:$0xf] %vm1310_vm8, %v2799_v62  ;;  %v758_v13 = vrot.slane %v756_v46, 5  ;;  %v1931_v62 = vrot.slane %v2835_v20, 9  ;;  %v954_v63 = vrot.slane %v2967_v29, 5 }
  0xb5   : > { %v423_v27 = vmax.f32 %v393_v14, 0.0  ;;  %620 = vst.msk [vmem:[#allocation2 + $0x34] sm:$0xf] %vm606_vm2, %v2967_v29 }
  0xb6   : > { %v1123_v39 = vpop.permute.xlu0 %1122  ;;  %1136 = vrot.lane.b32.xlu1 %v2831_v30, %s3574_s13  ;;  %v2933_v24 = vsel %vm2521_vm3, %v1931_v62, %v947_v12  ;;  %v956_v12 = vrot.slane %v954_v63, 4 }
  0xb7   : > { %1171 = vst.msk [vmem:[#allocation2] sm:$0xf] %vm1170_vm0, %v1123_v39  ;;  %1207 = vrot.lane.b32.xlu2 %v2806_v0, %s3572_s23 }
  0xb8   : > { %1244 = vst.msk [vmem:[#allocation2] sm:$0xf] %vm1243_vm1, %v2779_v41  ;;  %v1354_v43 = vpop.permute.xlu1 %1353  ;;  %v763_v41 = vor.u32 %v762_v42, %v758_v13 }
  0xb9   : > { %1311 = vst.msk [vmem:[#allocation2] sm:$0xf] %vm1310_vm8, %v2791_v49  ;;  %v2903_v48 = vpop.permute.xlu2 %1128  ;;  %v749_v49 = vrot.slane %v747_v45, 4 }
  0xba   : > { %1401 = vst.msk [vmem:[#allocation2 + $0x4] sm:$0xf] %vm3571_vm4, %v1354_v43  ;;  %v764_v57 = vrot.slane %v763_v41, 4 }
  0xbb   : > { %v753_v59 = vor.u32 %v752_v54, %v749_v49 }
  0xbc   : > { %1134 = vrot.lane.b32.xlu0 %v2785_v9, %s3574_s13  ;;  %v2926_v11 = vsel %vm2558_vm6, %v764_v57, %v768_v58 }
  0xbd   : > { %v754_v18 = vrot.slane %v753_v59, 4 }
  0xbe   : > { %v1352_v55 = vpop.permute.xlu0 %1351  ;;  %1274 = vrot.lane.b32.xlu1 %v2835_v20, %s3606_s16 }
  0xbf   : > { %1400 = vst.msk [vmem:[#allocation2] sm:$0xf] %vm3571_vm4, %v1352_v55  ;;  %1276 = vrot.lane.b32.xlu2 %v2837_v31, %s3606_s16  ;;  %vm501_vm4 = vmand %vm2936_vm5, %vm480_vm7 }
  0xc0   : > { %1473 = vst.msk [vmem:[#allocation2] sm:$0xf] %vm1472_vm9, %v2839_v17  ;;  %v823_v8 = vpop.permute.xlu1 %822  ;;  %v564_v32 = vsel %vm501_vm4, %v423_v27, 0.0  ;;  %v2950_v17 = vsel %vm2558_vm6, %v754_v18, %v758_v13  ;;  %vm1569_vm4 = vcmask 293888   ;;  %vm3612_vm5 = vmmov %vm3611_vm12  ;;  %v328_v27 = vld [vmem:[%s2425_s17 + $0xa8] sm:$0xff] }
  0xc1   : > { %869 = vst.msk [vmem:[#allocation2 + $0x8] sm:$0xf] %vm3578_vm13, %v823_v8  ;;  %v2919_v2 = vpop.permute.xlu2 %1266  ;;  %v2954_v44 = vpack.c.bf16 %v564_v32, %v564_v32 }
  0xc3   : > { %619 = vst.msk [vmem:[#allocation2 + $0x30] sm:$0xf] %vm606_vm2, %v2954_v44  ;;  %v1932_v34 = vrot.slane %v2954_v44, 9 }
  0xc4   : > { %1209 = vrot.lane.b32.xlu0 %v2812_v15, %s3572_s23 }
  0xc6   : > { %v1427_v21 = vpop.permute.xlu0 %1426  ;;  %1365 = vrot.lane.b32.xlu1 %v2926_v11, %s3609_s18 }
  0xc7   : > { %1474 = vst.msk [vmem:[#allocation2 + $0x4] sm:$0xf] %vm1472_vm9, %v1427_v21  ;;  %1436 = vrot.lane.b32.xlu2 %v2933_v24, %s3610_s21  ;;  %v3049_v21 = vld [vmem:[%s3558_s1] ss:$0 sm:$0xff] }
  0xc8   : > { %v973_v60 = vpop.permute.xlu1 %972  ;;  %v363_v26 = vmul.f32 %v3049_v21, %v329_v19  ;;  %v362_v28 = vmul.f32 %v3049_v21, %v328_v27  ;;  %v2040_v27 = vld [vmem:[%s3562_s5 + $0x38] sm:$0xff] }
  0xc9   : > { %1018 = vst.msk [vmem:[#allocation2 + $0xc] sm:$0xf] %vm1014_vm14, %v973_v60  ;;  %v1358_v22 = vpop.permute.xlu2 %1357  ;;  %v3065_v60 = vld [vmem:[%s3559_s2] ss:$0 sm:$0xff]  ;;  %1739 = vmatpush.bf16.msra.mxu1 %v2040_v27  ;;  %2092 = vmatpush.bf16.msra.mxu2 %v2040_v27 }
  0xca   : > { %v397_v33 = vadd.f32 %v3065_v60, %v363_v26  ;;  %v396_v35 = vadd.f32 %v3065_v60, %v362_v28 }
  0xcc   : > { %1363 = vrot.lane.b32.xlu0 %v2950_v17, %s3609_s18 }
  0xce   : > { %v971_v51 = vpop.permute.xlu0 %970  ;;  %v2023_v37 = vld [vmem:[#allocation2] sm:$0xff]  ;;  %834 = vrot.lane.b32.xlu1 %v2785_v9, %s3581_s10 }
  0xcf   : > { %1017 = vst.msk [vmem:[#allocation2 + $0x8] sm:$0xf] %vm1014_vm14, %v971_v51  ;;  %1976 = vmatmul.msk.bf16.vlgmr.msra.gmra.mxu0 %vm1569_vm4, %v2023_v37  ;;  %836 = vrot.lane.b32.xlu2 %v2831_v30, %s3581_s10  ;;  %v427_v37 = vmax.f32 %v397_v33, 0.0 }
  0xd0   : > { %1084 = vst.msk [vmem:[#allocation2 + $0x8] sm:$0xf] %vm1081_vm15, %v2881_v53  ;;  %v1127_v4 = vpop.permute.xlu1 %1126  ;;  %v327_v53 = vld [vmem:[%s2425_s17 + $0xa0] sm:$0xff] }
  0xd1   : > { %1173 = vst.msk [vmem:[#allocation2 + $0x8] sm:$0xf] %vm1170_vm0, %v1127_v4  ;;  %v827_v9 = vpop.permute.xlu2 %826  ;;  %v361_v30 = vmul.f32 %v2415_v5, %v327_v53  ;;  %v774_v5 = vshll.u32 %v2954_v44, 16 }
  0xd2   : > { %871 = vst.msk [vmem:[#allocation2 + $0x10] sm:$0xf] %vm3578_vm13, %v827_v9  ;;  %v426_v9 = vmax.f32 %v396_v35, 0.0  ;;  %v332_v35 = vld [vmem:[%s2425_s17 + $0xc8] sm:$0xff] }
  0xd3   : > { %v395_v39 = vadd.f32 %v2430_v7, %v361_v30  ;;  %v776_v42 = vrot.slane %v774_v5, 5 }
  0xd4   : > { %1438 = vrot.lane.b32.xlu0 %v2974_v16, %s3610_s21 }
  0xd6   : > { %v1040_v46 = vpop.permute.xlu0 %1039  ;;  %984 = vrot.lane.b32.xlu1 %v2812_v15, %s3579_s9  ;;  %v771_v15 = vshrl.u32 %v2954_v44, 16 }
  0xd7   : > { %1085 = vst.msk [vmem:[#allocation2 + $0xc] sm:$0xf] %vm1081_vm15, %v1040_v46  ;;  %1049 = vrot.lane.b32.xlu2 %v2835_v20, %s3576_s22  ;;  %v425_v20 = vmax.f32 %v395_v39, 0.0  ;;  %v3089_v46 = vsel %vm2521_vm3, %v1932_v34, %v954_v63 }
  0xd8   : > { %1174 = vst.msk [vmem:[#allocation2 + $0xc] sm:$0xf] %vm1170_vm0, %v2903_v48  ;;  %v1202_v52 = vpop.permute.xlu1 %1201  ;;  %v773_v13 = vrot.slane %v771_v15, 4  ;;  %v784_v48 = vshrl.u32 %v2967_v29, 16 }
  0xd9   : > { %1247 = vst.msk [vmem:[#allocation2 + $0xc] sm:$0xf] %vm1243_vm1, %v1202_v52  ;;  %v2994_v38 = vpop.permute.xlu2 %976  ;;  %v566_v43 = vsel %vm536_vm11, %v425_v20, 0.0  ;;  %v330_v20 = vld [vmem:[%s2425_s17 + $0xb8] sm:$0xff] }
  0xda   : > { %v777_v47 = vor.u32 %v776_v42, %v773_v13  ;;  %v596_v49 = vpack.c.bf16 %v566_v43, %v566_v43  ;;  %v786_v54 = vrot.slane %v784_v48, 4  ;;  %v364_v42 = vmul.f32 %v3049_v21, %v330_v20  ;;  %v333_v20 = vld [vmem:[%s2425_s17 + $0xd0] sm:$0xff] }
  0xdc   : > { %982 = vrot.lane.b32.xlu0 %v2806_v0, %s3579_s9  ;;  %v780_v0 = vshll.u32 %v2967_v29, 16  ;;  %v778_v55 = vrot.slane %v777_v47, 4  ;;  %v790_v58 = vshll.u32 %v596_v49, 16  ;;  %v957_v14 = vrot.slane %v596_v49, 5 }
  0xde   : > { %v1200_v40 = vpop.permute.xlu0 %1199  ;;  %1138 = vrot.lane.b32.xlu1 %v2950_v17, %s3574_s13  ;;  %v782_v50 = vrot.slane %v780_v0, 5  ;;  %v792_v59 = vrot.slane %v790_v58, 5  ;;  %v3060_v32 = vsel %vm2521_vm3, %v956_v12, %v957_v14 }
  0xdf   : > { %1246 = vst.msk [vmem:[#allocation2 + $0x8] sm:$0xf] %vm1243_vm1, %v1200_v40  ;;  %1140 = vrot.lane.b32.xlu2 %v2926_v11, %s3574_s13  ;;  %s3617_s13 = smov 20  }
  0xe0   : > { %1313 = vst.msk [vmem:[#allocation2 + $0x8] sm:$0xf] %vm1310_vm8, %v2919_v2  ;;  %v1356_v7 = vpop.permute.xlu1 %1355  ;;  %v787_v57 = vor.u32 %v786_v54, %v782_v50  ;;  %v3032_v62 = vsel %vm2558_vm6, %v778_v55, %v782_v50 }
  0xe1   : > { %1402 = vst.msk [vmem:[#allocation2 + $0x8] sm:$0xf] %vm3611_vm12, %v1356_v7  ;;  %v3014_v45 = vpop.permute.xlu2 %1130 }
  0xe4   : > { %1051 = vrot.lane.b32.xlu0 %v2837_v31, %s3576_s22  ;;  %v788_v31 = vrot.slane %v787_v57, 4  ;;  %s3615_s22 = smov 12  }
  0xe6   : > { %v1269_v41 = vpop.permute.xlu0 %1268  ;;  %1213 = vrot.lane.b32.xlu1 %v2974_v16, %s3572_s23  ;;  %v3037_v10 = vsel %vm2558_vm6, %v788_v31, %v792_v59 }
  0xe7   : > { %1314 = vst.msk [vmem:[#allocation2 + $0xc] sm:$0xf] %vm1310_vm8, %v1269_v41  ;;  %1278 = vrot.lane.b32.xlu2 %v2954_v44, %s3606_s16 }
  0xe8   : > { %1403 = vst.msk [vmem:[#allocation2 + $0xc] sm:$0xf] %vm3612_vm5, %v1358_v22  ;;  %v1431_v8 = vpop.permute.xlu1 %1430  ;;  %v443_v22 = vadd.s32 7, %v2406_v1 }
  0xe9   : > { %1476 = vst.msk [vmem:[#allocation2 + $0xc] sm:$0xf] %vm1472_vm9, %v1431_v8  ;;  %v3026_v61 = vpop.permute.xlu2 %1205 }
  0xea   : > { %vm457_vm11 = vcmp.ge.s32.totalorder %v443_v22, 1  ;;  %vm467_vm12 = vcmp.le.s32.totalorder %v443_v22, 16 }
  0xeb   : > { %vm3074_vm5 = vmand %vm457_vm11, %vm467_vm12  ;;  %vm3620_vm12 = vcmask 60448  }
  0xec   : > { %1211 = vrot.lane.b32.xlu0 %v2933_v24, %s3572_s23  ;;  %v568_v53 = vsel %vm3074_vm5, %v427_v37, 0.0  ;;  %s3616_s23 = smov 16  }
  0xed   : > { %v3093_v52 = vpack.c.bf16 %v568_v53, %v568_v53 }
  0xee   : > { %v1429_v2 = vpop.permute.xlu0 %1428  ;;  %1367 = vrot.lane.b32.xlu1 %v3032_v62, %s3609_s18 }
  0xef   : > { %1475 = vst.msk [vmem:[#allocation2 + $0x8] sm:$0xf] %vm1472_vm9, %v1429_v2  ;;  %1369 = vrot.lane.b32.xlu2 %v3037_v10, %s3609_s18  ;;  %v808_v50 = vshrl.u32 %v3093_v52, 16  ;;  %v961_v63 = vrot.slane %v3093_v52, 5 }
  0xf0   : > { %v975_v18 = vpop.permute.xlu1 %974  ;;  %622 = vst.msk [vmem:[#allocation2 + $0x3c] sm:$0xf] %vm606_vm2, %v3093_v52 }
  0xf1   : > { %1019 = vst.msk [vmem:[#allocation2 + $0x10] sm:$0xf] %vm1014_vm14, %v975_v18  ;;  %v3053_v25 = vpop.permute.xlu2 %1359  ;;  %v810_v8 = vrot.slane %v808_v50, 4  ;;  %v963_v18 = vrot.slane %v961_v63, 4  ;;  %v2034_v50 = vld [vmem:[%s3562_s5 + $0x8] sm:$0xff] }
  0xf4   : > { %1280 = vrot.lane.b32.xlu0 %v2967_v29, %s3606_s16 }
  0xf6   : > { %v829_v36 = vpop.permute.xlu0 %828  ;;  %v2024_v51 = vld [vmem:[#allocation2 + $0x8] sm:$0xff]  ;;  %1442 = vrot.lane.b32.xlu1 %v3060_v32, %s3610_s21 }
  0xf7   : > { %872 = vst.msk [vmem:[#allocation2 + $0x14] sm:$0xf] %vm3578_vm13, %v829_v36  ;;  %1977 = vmatmul.msk.bf16.gmra.mxu0 %vm1569_vm4, %v2024_v51  ;;  %vm504_vm13 = vmand %vm3074_vm5, %vm480_vm7  ;;  %838 = vrot.lane.b32.xlu2 %v2950_v17, %s3581_s10  ;;  %v2039_v51 = vld [vmem:[%s3562_s5 + $0x30] sm:$0xff] }
  0xf8   : > { %1020 = vst.msk [vmem:[#allocation2 + $0x14] sm:$0xf] %vm1014_vm14, %v2994_v38  ;;  %v1044_v30 = vpop.permute.xlu1 %1043  ;;  %v567_v38 = vsel %vm504_vm13, %v426_v9, 0.0  ;;  %vm3618_vm13 = vcmask 257248   ;;  %v366_v9 = vmul.f32 %v3049_v21, %v332_v35  ;;  %1740 = vmatpush.bf16.msra.mxu1 %v2039_v51  ;;  %2093 = vmatpush.bf16.msra.mxu2 %v2039_v51 }
  0xf9   : > { %1087 = vst.msk [vmem:[#allocation2 + $0x14] sm:$0xf] %vm1081_vm15, %v1044_v30  ;;  %v3096_v39 = vpack.c.bf16 %v567_v38, %v567_v38  ;;  %v1435_v15 = vpop.permute.xlu2 %1434  ;;  %vm3619_vm11 = vmmov %vm3618_vm13  ;;  %v331_v30 = vld [vmem:[%s2425_s17 + $0xc0] sm:$0xff]  ;;  %v444_v38 = vadd.s32 8, %v2406_v1 }
  0xfb   : > { %621 = vst.msk [vmem:[#allocation2 + $0x38] sm:$0xf] %vm606_vm2, %v3096_v39  ;;  %v795_v7 = vshrl.u32 %v3096_v39, 16  ;;  %vm539_vm2 = vmand %vm3074_vm5, %vm515_vm10 }
  0xfc   : > { %1440 = vrot.lane.b32.xlu0 %v3089_v46, %s3610_s21  ;;  %vm3621_vm5 = vmmov %vm3620_vm12 }
  0xfe   : > { %v1042_v5 = vpop.permute.xlu0 %1041  ;;  %986 = vrot.lane.b32.xlu1 %v2933_v24, %s3579_s9 }
  0xff   : > { %1086 = vst.msk [vmem:[#allocation2 + $0x10] sm:$0xf] %vm1081_vm15, %v1042_v5  ;;  %988 = vrot.lane.b32.xlu2 %v2974_v16, %s3579_s9  ;;  %v398_v16 = vadd.f32 %v3065_v60, %v364_v42  ;;  %v400_v5 = vadd.f32 %v3065_v60, %v366_v9 }
 0x100   : > { %1175 = vst.msk [vmem:[#allocation2 + $0x10] sm:$0xf] %vm1170_vm0, %v3014_v45  ;;  %v1204_v17 = vpop.permute.xlu1 %1203  ;;  %v797_v45 = vrot.slane %v795_v7, 4 }
 0x101   : > { %1248 = vst.msk [vmem:[#allocation2 + $0x10] sm:$0xf] %vm1243_vm1, %v1204_v17  ;;  %v3112_v40 = vpop.permute.xlu2 %978  ;;  %v428_v43 = vmax.f32 %v398_v16, 0.0  ;;  %v367_v16 = vmul.f32 %v3049_v21, %v333_v20 }
 0x103   : > { %v569_v49 = vsel %vm539_vm2, %v428_v43, 0.0  ;;  %vm458_vm2 = vcmp.ge.s32.totalorder %v444_v38, 1 }
 0x104   : > { %840 = vrot.lane.b32.xlu0 %v2926_v11, %s3581_s10  ;;  %v599_v58 = vpack.c.bf16 %v569_v49, %v569_v49 }
 0x106   : > { %v1133_v13 = vpop.permute.xlu0 %1132  ;;  %1055 = vrot.lane.b32.xlu1 %v2967_v29, %s3615_s22  ;;  %v798_v29 = vshll.u32 %v3096_v39, 16  ;;  %v814_v14 = vshll.u32 %v599_v58, 16  ;;  %v964_v19 = vrot.slane %v599_v58, 5  ;;  %v2033_v58 = vld [vmem:[%s3562_s5] sm:$0xff] }
 0x107   : > { %1176 = vst.msk [vmem:[#allocation2 + $0x14] sm:$0xf] %vm1170_vm0, %v1133_v13  ;;  %1142 = vrot.lane.b32.xlu2 %v3032_v62, %s3616_s23  ;;  %v2037_v13 = vld [vmem:[%s3562_s5 + $0x20] sm:$0xff] }
 0x108   : > { %1249 = vst.msk [vmem:[#allocation2 + $0x14] sm:$0xf] %vm1243_vm1, %v3026_v61  ;;  %v1273_v24 = vpop.permute.xlu1 %1272  ;;  %v800_v47 = vrot.slane %v798_v29, 5  ;;  %v1933_v61 = vrot.slane %v3096_v39, 9  ;;  %v816_v33 = vrot.slane %v814_v14, 5  ;;  %v3177_v34 = vsel %vm2521_vm3, %v963_v18, %v964_v19 }
 0x109   : > { %1316 = vst.msk [vmem:[#allocation2 + $0x14] sm:$0xf] %vm1310_vm8, %v1273_v24  ;;  %v3127_v11 = vpop.permute.xlu2 %1047  ;;  %v430_v24 = vmax.f32 %v400_v5, 0.0 }
 0x10a   : > { %v801_v48 = vor.u32 %v800_v47, %v797_v45 }
 0x10c   : > { %1053 = vrot.lane.b32.xlu0 %v2954_v44, %s3615_s22  ;;  %v804_v44 = vshll.u32 %v3093_v52, 16  ;;  %v802_v54 = vrot.slane %v801_v48, 4 }
 0x10e   : > { %v1271_v0 = vpop.permute.xlu0 %1270  ;;  %1215 = vrot.lane.b32.xlu1 %v3089_v46, %s3617_s13  ;;  %v806_v57 = vrot.slane %v804_v44, 5 }
 0x10f   : > { %1315 = vst.msk [vmem:[#allocation2 + $0x10] sm:$0xf] %vm1310_vm8, %v1271_v0  ;;  %1217 = vrot.lane.b32.xlu2 %v3060_v32, %s3617_s13  ;;  %v401_v0 = vadd.f32 %v3065_v60, %v367_v16 }
 0x110   : > { %1404 = vst.msk [vmem:[#allocation2 + $0x10] sm:$0xf] %vm3618_vm13, %v3053_v25  ;;  %v1433_v41 = vpop.permute.xlu1 %1432  ;;  %v3153_v59 = vsel %vm2558_vm6, %v802_v54, %v806_v57  ;;  %v811_v12 = vor.u32 %v810_v8, %v806_v57  ;;  %v3173_v25 = vsel %vm2521_vm3, %v1933_v61, %v961_v63  ;;  %vm468_vm13 = vcmp.le.s32.totalorder %v444_v38, 16 }
 0x111   : > { %1477 = vst.msk [vmem:[#allocation2 + $0x10] sm:$0xf] %vm1472_vm9, %v1433_v41  ;;  %v3147_v55 = vpop.permute.xlu2 %1207  ;;  %v431_v48 = vmax.f32 %v401_v0, 0.0 }
 0x112   : > { %v812_v28 = vrot.slane %v811_v12, 4 }
 0x114   : > { %1144 = vrot.lane.b32.xlu0 %v3037_v10, %s3616_s23  ;;  %v3191_v37 = vsel %vm2558_vm6, %v812_v28, %v816_v33 }
 0x116   : > { %v1362_v31 = vpop.permute.xlu0 %1361  ;;  %1284 = vrot.lane.b32.xlu1 %v3093_v52, %s3606_s16 }
 0x117   : > { %1405 = vst.msk [vmem:[#allocation2 + $0x14] sm:$0xf] %vm3619_vm11, %v1362_v31  ;;  %1371 = vrot.lane.b32.xlu2 %v3153_v59, %s3609_s18  ;;  %vm3222_vm11 = vmand %vm458_vm2, %vm468_vm13  ;;  %vm3626_vm13 = vcmask 257248  }
 0x118   : > { %1478 = vst.msk [vmem:[#allocation2 + $0x14] sm:$0xf] %vm1472_vm9, %v1435_v15  ;;  %v833_v2 = vpop.permute.xlu1 %832  ;;  %v2038_v15 = vld [vmem:[%s3562_s5 + $0x28] sm:$0xff]  ;;  %vm542_vm2 = vmand %vm3222_vm11, %vm515_vm10 }
 0x119   : > { %874 = vst.msk [vmem:[#allocation2 + $0x1c] sm:$0xf] %vm3620_vm12, %v833_v2  ;;  %v3164_v26 = vpop.permute.xlu2 %1276  ;;  %1741 = vmatpush.bf16.msra.mxu1 %v2038_v15  ;;  %2094 = vmatpush.bf16.msra.mxu2 %v2038_v15  ;;  %vm3625_vm12 = vmmov %vm3621_vm5  ;;  %v445_v15 = vadd.s32 9, %v2406_v1 }
 0x11c   : > { %1282 = vrot.lane.b32.xlu0 %v3096_v39, %s3606_s16 }
 0x11d   : > { %1742 = vmatpush.bf16.msra.mxu1 %v2037_v13  ;;  %2095 = vmatpush.bf16.msra.mxu2 %v2037_v13 }
 0x11e   : > { %v831_v22 = vpop.permute.xlu0 %830  ;;  %1444 = vrot.lane.b32.xlu1 %v3173_v25, %s3610_s21 }
 0x11f   : > { %873 = vst.msk [vmem:[#allocation2 + $0x18] sm:$0xf] %vm3621_vm5, %v831_v22  ;;  %v2025_v36 = vld [vmem:[#allocation2 + $0x10] sm:$0xff]  ;;  %1446 = vrot.lane.b32.xlu2 %v3177_v34, %s3610_s21  ;;  %vm507_vm5 = vmand %vm3222_vm11, %vm480_vm7 }
 0x120   : > { %1021 = vst.msk [vmem:[#allocation2 + $0x18] sm:$0xf] %vm1014_vm14, %v3112_v40  ;;  %1978 = vmatmul.msk.bf16.gmra.mxu0 %vm1569_vm4, %v2025_v36  ;;  %v1046_v4 = vpop.permute.xlu1 %1045  ;;  %v365_v40 = vmul.f32 %v3049_v21, %v331_v30 }
 0x121   : > { %1088 = vst.msk [vmem:[#allocation2 + $0x18] sm:$0xf] %vm1081_vm15, %v1046_v4  ;;  %v3197_v53 = vpop.permute.xlu2 %1436 }
 0x124   : > { %1373 = vrot.lane.b32.xlu0 %v3191_v37, %s3609_s18 }
 0x126   : > { %v981_v17 = vpop.permute.xlu0 %980  ;;  %844 = vrot.lane.b32.xlu1 %v3037_v10, %s3581_s10  ;;  %v399_v10 = vadd.f32 %v3065_v60, %v365_v40 }
 0x127   : > { %1022 = vst.msk [vmem:[#allocation2 + $0x1c] sm:$0xf] %vm1014_vm14, %v981_v17  ;;  %990 = vrot.lane.b32.xlu2 %v3089_v46, %s3622_s0  ;;  %v571_v46 = vsel %vm3222_vm11, %v430_v24, 0.0  ;;  %vm3627_vm11 = vmmov %vm3626_vm13 }
 0x128   : > { %1089 = vst.msk [vmem:[#allocation2 + $0x1c] sm:$0xf] %vm1081_vm15, %v3127_v11  ;;  %v1137_v42 = vpop.permute.xlu1 %1136  ;;  %v2036_v11 = vld [vmem:[%s3562_s5 + $0x18] sm:$0xff]  ;;  %v429_v45 = vmax.f32 %v399_v10, 0.0  ;;  %v3247_v47 = vpack.c.bf16 %v571_v46, %v571_v46  ;;  %v3332_v46 = vld [vmem:[%s3561_s4] ss:$0 sm:$0xff] }
 0x129   : > { %1178 = vst.msk [vmem:[#allocation2 + $0x1c] sm:$0xf] %vm1170_vm0, %v1137_v42  ;;  %v837_v29 = vpop.permute.xlu2 %836  ;;  %1743 = vmatpush.bf16.msra.mxu1 %v2036_v11  ;;  %2096 = vmatpush.bf16.msra.mxu2 %v2036_v11 }
 0x12a   : > { %876 = vst.msk [vmem:[#allocation2 + $0x24] sm:$0xf] %vm3625_vm12, %v837_v29  ;;  %v1112_v49 = vshrl.u32 %v3247_v47, 16  ;;  %v1190_v30 = vrot.slane %v3247_v47, 5  ;;  %v335_v29 = vld [vmem:[%s2425_s17 + $0xe0] sm:$0xff] }
 0x12c   : > { %842 = vrot.lane.b32.xlu0 %v3032_v62, %s3581_s10  ;;  %v2035_v62 = vld [vmem:[%s3562_s5 + $0x10] sm:$0xff]  ;;  %v1114_v31 = vrot.slane %v1112_v49, 4  ;;  %v1192_v42 = vrot.slane %v1190_v30, 4 }
 0x12d   : > { %1744 = vmatpush.bf16.msra.mxu1 %v2035_v62  ;;  %2097 = vmatpush.bf16.msra.mxu2 %v2035_v62 }
 0x12e   : > { %v1135_v43 = vpop.permute.xlu0 %1134  ;;  %1057 = vrot.lane.b32.xlu1 %v3096_v39, %s3615_s22  ;;  %v570_v39 = vsel %vm507_vm5, %v429_v45, 0.0  ;;  %vm459_vm5 = vcmp.ge.s32.totalorder %v445_v15, 1 }
 0x12f   : > { %1177 = vst.msk [vmem:[#allocation2 + $0x18] sm:$0xf] %vm1170_vm0, %v1135_v43  ;;  %1059 = vrot.lane.b32.xlu2 %v3093_v52, %s3615_s22  ;;  %v1108_v52 = vshll.u32 %v3247_v47, 16  ;;  %v3265_v54 = vpack.c.bf16 %v570_v39, %v570_v39 }
 0x130   : > { %1250 = vst.msk [vmem:[#allocation2 + $0x18] sm:$0xf] %vm1243_vm1, %v3147_v55  ;;  %v1275_v44 = vpop.permute.xlu1 %1274  ;;  %v572_v55 = vsel %vm542_vm2, %v431_v48, 0.0  ;;  %vm469_vm2 = vcmp.le.s32.totalorder %v445_v15, 16 }
 0x131   : > { %1317 = vst.msk [vmem:[#allocation2 + $0x18] sm:$0xf] %vm1310_vm8, %v1275_v44  ;;  %v3256_v41 = vpop.permute.xlu2 %1049  ;;  %1745 = vmatpush.bf16.msra.mxu1 %v2034_v50  ;;  %2098 = vmatpush.bf16.msra.mxu2 %v2034_v50  ;;  %v1110_v8 = vrot.slane %v1108_v52, 5  ;;  %v1099_v63 = vshrl.u32 %v3265_v54, 16  ;;  %v1102_v2 = vshll.u32 %v3265_v54, 16  ;;  %v1934_v38 = vrot.slane %v3265_v54, 9 }
 0x133   : > { %v1115_v14 = vor.u32 %v1114_v31, %v1110_v8  ;;  %v1101_v19 = vrot.slane %v1099_v63, 4  ;;  %v3313_v20 = vsel %vm2521_vm3, %v1934_v38, %v1190_v30 }
 0x134   : > { %992 = vrot.lane.b32.xlu0 %v3060_v32, %s3622_s0  ;;  %v602_v32 = vpack.c.bf16 %v572_v55, %v572_v55 }
 0x135   : > { %1746 = vmatpush.bf16.msra.mxu1 %v2033_v58  ;;  %2099 = vmatpush.bf16.msra.mxu2 %v2033_v58  ;;  %v1116_v28 = vrot.slane %v1115_v14, 4 }
 0x136   : > { %v1210_v57 = vpop.permute.xlu0 %1209  ;;  %1148 = vrot.lane.b32.xlu1 %v3191_v37, %s3616_s23  ;;  %v1118_v18 = vshll.u32 %v602_v32, 16  ;;  %v1193_v24 = vrot.slane %v602_v32, 5  ;;  %v336_v32 = vld [vmem:[%s2425_s17 + $0xe8] sm:$0xff] }
 0x137   : > { %1251 = vst.msk [vmem:[#allocation2 + $0x1c] sm:$0xf] %vm1243_vm1, %v1210_v57  ;;  %1219 = vrot.lane.b32.xlu2 %v3173_v25, %s3617_s13  ;;  %v370_v63 = vmul.f32 %v3049_v21, %v336_v32 }
 0x138   : > { %1318 = vst.msk [vmem:[#allocation2 + $0x1c] sm:$0xf] %vm1310_vm8, %v3164_v26  ;;  %v1366_v61 = vpop.permute.xlu1 %1365  ;;  %v1104_v26 = vrot.slane %v1102_v2, 5  ;;  %v1120_v33 = vrot.slane %v1118_v18, 5  ;;  %v1194_v0 = vsel %vm2521_vm3, %v1192_v42, %v1193_v24 }
 0x139   : > { %1407 = vst.msk [vmem:[#allocation2 + $0x1c] sm:$0xf] %vm3626_vm13, %v1366_v61  ;;  %v3280_v12 = vpop.permute.xlu2 %1140  ;;  %vm3325_vm13 = vmand %vm459_vm5, %vm469_vm2  ;;  %v404_v18 = vadd.f32 %v3065_v60, %v370_v63 }
 0x13a   : > { %v1105_v35 = vor.u32 %v1104_v26, %v1101_v19  ;;  %v3298_v51 = vsel %vm2558_vm6, %v1116_v28, %v1120_v33  ;;  %vm545_vm5 = vmand %vm3325_vm13, %vm515_vm10 }
 0x13b   : > { %vm3632_vm10 = vmmov %vm3625_vm12 }
 0x13c   : > { %1146 = vrot.lane.b32.xlu0 %v3153_v59, %s3616_s23  ;;  %v1106_v4 = vrot.slane %v1105_v35, 4 }
 0x13e   : > { %v1364_v27 = vpop.permute.xlu0 %1363  ;;  %1286 = vrot.lane.b32.xlu1 %v3265_v54, %s3606_s16  ;;  %v1111_v5 = vsel %vm2558_vm6, %v1106_v4, %v1110_v8 }
 0x13f   : > { %1406 = vst.msk [vmem:[#allocation2 + $0x18] sm:$0xf] %vm3627_vm11, %v1364_v27  ;;  %1288 = vrot.lane.b32.xlu2 %v3247_v47, %s3606_s16  ;;  %vm510_vm11 = vmand %vm3325_vm13, %vm480_vm7  ;;  %vm3630_vm7 = vcmask 257248   ;;  %v434_v27 = vmax.f32 %v404_v18, 0.0 }
 0x140   : > { %1479 = vst.msk [vmem:[#allocation2 + $0x18] sm:$0xf] %vm1472_vm9, %v3197_v53  ;;  %v835_v22 = vpop.permute.xlu1 %834  ;;  %v334_v53 = vld [vmem:[%s2425_s17 + $0xd8] sm:$0xff]  ;;  %vm3631_vm2 = vmmov %vm3630_vm7 }
 0x141   : > { %875 = vst.msk [vmem:[#allocation2 + $0x20] sm:$0xf] %vm3625_vm12, %v835_v22  ;;  %v3292_v36 = vpop.permute.xlu2 %1278  ;;  %v368_v40 = vmul.f32 %v3049_v21, %v334_v53 }
 0x143   : > { %v402_v16 = vadd.f32 %v3065_v60, %v368_v40 }
 0x144   : > { %1221 = vrot.lane.b32.xlu0 %v3177_v34, %s3617_s13 }
 0x145   : > { %v432_v45 = vmax.f32 %v402_v16, 0.0 }
 0x146   : > { %v1439_v9 = vpop.permute.xlu0 %1438  ;;  %1377 = vrot.lane.b32.xlu1 %v3298_v51, %s3609_s18 }
 0x147   : > { %1480 = vst.msk [vmem:[#allocation2 + $0x1c] sm:$0xf] %vm1472_vm9, %v1439_v9  ;;  %1448 = vrot.lane.b32.xlu2 %v3313_v20, %s3610_s21 }
 0x148   : > { %v985_v17 = vpop.permute.xlu1 %984 }
 0x149   : > { %1024 = vst.msk [vmem:[#allocation2 + $0x24] sm:$0xf] %vm1014_vm14, %v985_v17  ;;  %v3315_v13 = vpop.permute.xlu2 %1369 }
 0x14c   : > { %1375 = vrot.lane.b32.xlu0 %v1111_v5, %s3609_s18  ;;  %v1607_v1 = vpop.f32.mrf.mxu0 }
 0x14d   : > { %v1608_v44 = vadd.f32 %v3332_v46, %v1607_v1 }
 0x14e   : > { %v983_v10 = vpop.permute.xlu0 %982  ;;  %v2026_v7 = vld [vmem:[#allocation2 + $0x18] sm:$0xff]  ;;  %846 = vrot.lane.b32.xlu1 %v3153_v59, %s3581_s10  ;;  %v369_v59 = vmul.f32 %v3049_v21, %v335_v29 }
 0x14f   : > { %1023 = vst.msk [vmem:[#allocation2 + $0x20] sm:$0xf] %vm1014_vm14, %v983_v10  ;;  %1979 = vmatmul.msk.bf16.gmra.mxu0 %vm1569_vm4, %v2026_v7  ;;  %848 = vrot.lane.b32.xlu2 %v3191_v37, %s3581_s10  ;;  %v1647_v37 = vmax.f32 %v1608_v44, 0.0 }
 0x150   : > { %1090 = vst.msk [vmem:[#allocation2 + $0x20] sm:$0xf] %vm1081_vm15, %v3256_v41  ;;  %v1139_v43 = vpop.permute.xlu1 %1138  ;;  %v403_v39 = vadd.f32 %v3065_v60, %v369_v59  ;;  %v573_v41 = vsel %vm510_vm11, %v432_v45, 0.0  ;;  %vm3636_vm11 = vmmov %vm3632_vm10 }
 0x151   : > { %1179 = vst.msk [vmem:[#allocation2 + $0x20] sm:$0xf] %vm1170_vm0, %v1139_v43  ;;  %v839_v62 = vpop.permute.xlu2 %838  ;;  %v3357_v49 = vpack.c.bf16 %v573_v41, %v573_v41 }
 0x152   : > { %877 = vst.msk [vmem:[#allocation2 + $0x28] sm:$0xf] %vm3625_vm12, %v839_v62  ;;  %v433_v57 = vmax.f32 %v403_v39, 0.0  ;;  %vm3637_vm12 = vmmov %vm3632_vm10 }
 0x153   : > { %v1331_v31 = vshll.u32 %v3357_v49, 16  ;;  %v1935_v16 = vrot.slane %v3357_v49, 9 }
 0x154   : > { %1450 = vrot.lane.b32.xlu0 %v1194_v0, %s3610_s21  ;;  %v1609_v48 = vpop.f32.mrf.mxu0  ;;  %v574_v61 = vsel %vm3325_vm13, %v433_v57, 0.0  ;;  %vm3635_vm13 = vmmov %vm3632_vm10 }
 0x155   : > { %v1610_v3 = vadd.f32 %v3332_v46, %v1609_v48 }
 0x156   : > { %v1052_v50 = vpop.permute.xlu0 %1051  ;;  %996 = vrot.lane.b32.xlu1 %v3177_v34, %s3622_s0  ;;  %v1328_v34 = vshrl.u32 %v3357_v49, 16 }
 0x157   : > { %1091 = vst.msk [vmem:[#allocation2 + $0x24] sm:$0xf] %vm1081_vm15, %v1052_v50  ;;  %v1648_v52 = vmax.f32 %v1610_v3, 0.0  ;;  %1061 = vrot.lane.b32.xlu2 %v3265_v54, %s3615_s22  ;;  %v604_v54 = vpack.c.bf16 %v574_v61, %v574_v61 }
 0x158   : > { %1180 = vst.msk [vmem:[#allocation2 + $0x24] sm:$0xf] %vm1170_vm0, %v3280_v12  ;;  %v1214_v55 = vpop.permute.xlu1 %1213  ;;  %v1333_v12 = vrot.slane %v1331_v31, 5 }
 0x159   : > { %v1663_v58 = vpack.c.bf16 %v1648_v52, %v1647_v37  ;;  %1253 = vst.msk [vmem:[#allocation2 + $0x24] sm:$0xf] %vm1243_vm1, %v1214_v55  ;;  %v3361_v8 = vpop.permute.xlu2 %988  ;;  %v1337_v26 = vshll.u32 %v604_v54, 16  ;;  %v1341_v35 = vshrl.u32 %v604_v54, 16  ;;  %v1419_v4 = vrot.slane %v604_v54, 5 }
 0x15b   : > { %1747 = vmatmul.bf16.vlgmr.msra.gmra.mxu1 %v1663_v58  ;;  %v1339_v33 = vrot.slane %v1337_v26, 5  ;;  %v1343_v9 = vrot.slane %v1341_v35, 4  ;;  %v1421_v15 = vrot.slane %v1419_v4, 4  ;;  %v1420_v23 = vsel %vm2521_vm3, %v1935_v16, %v1419_v4 }
 0x15c   : > { %994 = vrot.lane.b32.xlu0 %v3173_v25, %s3622_s0  ;;  %v1330_v25 = vrot.slane %v1328_v34, 4  ;;  %s293_s0 = sand.u32 1, %s2257_s25  }
 0x15d   : > { %v1344_v30 = vor.u32 %v1343_v9, %v1339_v33 }
 0x15e   : > { %v1212_v2 = vpop.permute.xlu0 %1211  ;;  %1150 = vrot.lane.b32.xlu1 %v1111_v5, %s3616_s23  ;;  %v1334_v21 = vor.u32 %v1333_v12, %v1330_v25 }
 0x15f   : > { %1252 = vst.msk [vmem:[#allocation2 + $0x20] sm:$0xf] %vm1243_vm1, %v1212_v2  ;;  %1152 = vrot.lane.b32.xlu2 %v3298_v51, %s3616_s23  ;;  %v1345_v17 = vrot.slane %v1344_v30, 4  ;;  %s2019_s23 = sshll.u32 %s2269_s28, 5 }
 0x160   : > { %1319 = vst.msk [vmem:[#allocation2 + $0x20] sm:$0xf] %vm1310_vm8, %v3292_v36  ;;  %v1368_v14 = vpop.permute.xlu1 %1367  ;;  %v1335_v60 = vrot.slane %v1334_v21, 4 }
 0x161   : > { %1408 = vst.msk [vmem:[#allocation2 + $0x20] sm:$0xf] %vm3630_vm7, %v1368_v14  ;;  %v1143_v19 = vpop.permute.xlu2 %1142  ;;  %vm3638_vm7 = vmmov %vm3631_vm2 }
 0x162   : > { %v1340_v6 = vsel %vm2558_vm6, %v1335_v60, %v1339_v33 }
 0x164   : > { %1063 = vrot.lane.b32.xlu0 %v3247_v47, %s3615_s22  ;;  %v575_v47 = vsel %vm545_vm5, %v434_v27, 0.0  ;;  %vm3639_vm5 = vmmov %vm3631_vm2  ;;  %s2041_s22 = sshll.u32 %s2265_s27, 4  ;;  %s1821_s27 = scalar_lea.sflag [#allocation4], %s293_s0 }
 0x165   : > { %v605_v51 = vpack.c.bf16 %v575_v47, %v575_v47 }
 0x166   : > { %v1281_v28 = vpop.permute.xlu0 %1280  ;;  %1225 = vrot.lane.b32.xlu1 %v1194_v0, %s3617_s13 }
 0x167   : > { %1320 = vst.msk [vmem:[#allocation2 + $0x24] sm:$0xf] %vm1310_vm8, %v1281_v28  ;;  %1290 = vrot.lane.b32.xlu2 %v3357_v49, %s3606_s16  ;;  %v1347_v38 = vshll.u32 %v605_v51, 16  ;;  %v1422_v5 = vrot.slane %v605_v51, 5 }
 0x168   : > { %1409 = vst.msk [vmem:[#allocation2 + $0x24] sm:$0xf] %vm3631_vm2, %v3315_v13  ;;  %v1443_v22 = vpop.permute.xlu1 %1442 }
 0x169   : > { %1482 = vst.msk [vmem:[#allocation2 + $0x24] sm:$0xf] %vm1472_vm9, %v1443_v22  ;;  %v1218_v36 = vpop.permute.xlu2 %1217  ;;  %v1349_v40 = vrot.slane %v1347_v38, 5  ;;  %v1423_v42 = vsel %vm2521_vm3, %v1421_v15, %v1422_v5  ;;  %vm3633_vm3 = vmmov %vm3631_vm2 }
 0x16c   : > { %1223 = vrot.lane.b32.xlu0 %v3313_v20, %s3617_s13  ;;  %v1350_v20 = vsel %vm2558_vm6, %v1345_v17, %v1349_v40  ;;  %vm3634_vm6 = vmmov %vm3631_vm2  ;;  %s1833_s13 = sadd.s32 %s2041_s22, %s2019_s23 }
 0x16d   : > { %vm3640_vm2 = vmmov %vm3632_vm10  ;;  %s2020_s9 = sshll.u32 %s1833_s13, 2 }
 0x16e   : > { %v1441_v53 = vpop.permute.xlu0 %1440  ;;  %1379 = vrot.lane.b32.xlu1 %v1340_v6, %s3609_s18 }
 0x16f   : > { %1481 = vst.msk [vmem:[#allocation2 + $0x20] sm:$0xf] %vm1472_vm9, %v1441_v53  ;;  %1381 = vrot.lane.b32.xlu2 %v1350_v20, %s3609_s18  ;;  %s1922_s18 = sshll.u32 %s293_s0, 6 }
 0x170   : > { %v987_v13 = vpop.permute.xlu1 %986 }
 0x171   : > { %1025 = vst.msk [vmem:[#allocation2 + $0x28] sm:$0xf] %vm1014_vm14, %v987_v13  ;;  %v1372_v1 = vpop.permute.xlu2 %1371 }
 0x174   : > { %1292 = vrot.lane.b32.xlu0 %v604_v54, %s3606_s16  ;;  %v1612_v24 = vpop.f32.mrf.mxu0  ;;  %s1835_s16 = scalar_lea.hbm %s3564_s7, %s2020_s9  ;;  %s2207_s9 = scalar_lea.hbm %s3564_s7, 256 }
 0x175   : > { %v1613_v0 = vadd.f32 %v3332_v46, %v1612_v24  ;;  %v3464_v24 = vld [vmem:[%s3563_s6] ss:$0 sm:$0xff]  ;;  %s1838_s10 = sshll.u32 %s1835_s16, 4  ;;  %s1839_s10 = int_to_ptr.hbm [resolvable:$true] %s1838_s10 }
 0x176   : > { %v841_v10 = vpop.permute.xlu0 %840  ;;  %v2027_v7 = vld [vmem:[#allocation2 + $0x20] sm:$0xff]  ;;  %1454 = vrot.lane.b32.xlu1 %v1423_v42, %s3610_s21  ;;  %s2201_s28 = sshra.s32 %s1839_s10, 4  ;;  %s2202_s28 = int_to_ptr.hbm [resolvable:$true] %s2201_s28 }
 0x177   : > { %878 = vst.msk [vmem:[#allocation2 + $0x2c] sm:$0xf] %vm3632_vm10, %v841_v10  ;;  %1980 = vmatmul.msk.bf16.gmra.mxu0 %vm1569_vm4, %v2027_v7  ;;  %v1649_v62 = vmax.f32 %v1613_v0, 0.0  ;;  %s2203_s22 = scalar_lea.hbm %s2202_s28, 64  ;;  %p2208_p2 = scmp.lt.s32.totalorder %s2202_s28, %s3564_s7 }
 0x178   : > { %1026 = vst.msk [vmem:[#allocation2 + $0x2c] sm:$0xf] %vm1014_vm14, %v3361_v8  ;;  %v1056_v29 = vpop.permute.xlu1 %1055  ;;  %p2204_p13 = scmp.ne.s32.totalorder %s2202_s28, %s2203_s22  ;;  %p2209_p4 = scmp.lt.s32.totalorder %s2207_s9, %s2203_s22 }
 0x179   : > { %1093 = vst.msk [vmem:[#allocation2 + $0x2c] sm:$0xf] %vm1081_vm15, %v1056_v29  ;;  %v1447_v11 = vpop.permute.xlu2 %1446 }
 0x17a   : > { %p2205_p0 = pnand %p2204_p13, %p2383_p3  ;;  %p2210_p5 = por %p2209_p4, %p2208_p2 }
 0x17c   : > { %1452 = vrot.lane.b32.xlu0 %v1420_v23, %s3610_s21  ;;  %v1614_v43 = vpop.f32.mrf.mxu0  ;;  %s3473_s21 = scalar_lea.vmem [#allocation3], %s1922_s18  ;;  %p2206_p1 = pneg %p2205_p0 }
 0x17d   : > { %v1615_v45 = vadd.f32 %v3332_v46, %v1614_v43  ;;  %s1836_s18 = sshll.u32 %s3473_s21, 4  ;;  %s1837_s18 = int_to_ptr.vmem [resolvable:$true] %s1836_s18 }
 0x17e   : > { %v1054_v59 = vpop.permute.xlu0 %1053  ;;  %p2211_p6 = pnand %p2210_p5, %p2206_p1 }
 0x17f   : > { %1092 = vst.msk [vmem:[#allocation2 + $0x28] sm:$0xf] %vm1081_vm15, %v1054_v59  ;;  %v1650_v44 = vmax.f32 %v1615_v45, 0.0 }
 0x180   : > { %1181 = vst.msk [vmem:[#allocation2 + $0x28] sm:$0xf] %vm1170_vm0, %v1143_v19  ;;  %v1216_v56 = vpop.permute.xlu1 %1215 }
 0x181   : > { %v1664_v48 = vpack.c.bf16 %v1650_v44, %v1649_v62  ;;  %1254 = vst.msk [vmem:[#allocation2 + $0x28] sm:$0xf] %vm1243_vm1, %v1216_v56  ;;  %v991_v39 = vpop.permute.xlu2 %990 }
 0x183   : > { %1752 = vmatmul.bf16.gmra.mxu1 %v1664_v48 }
 0x186   : > { %v1145_v41 = vpop.permute.xlu0 %1144 }
 0x187   : > { %1182 = vst.msk [vmem:[#allocation2 + $0x2c] sm:$0xf] %vm1170_vm0, %v1145_v41 }
 0x188   : > { %1255 = vst.msk [vmem:[#allocation2 + $0x2c] sm:$0xf] %vm1243_vm1, %v1218_v36  ;;  %v1285_v50 = vpop.permute.xlu1 %1284 }
 0x189   : > { %1322 = vst.msk [vmem:[#allocation2 + $0x2c] sm:$0xf] %vm1310_vm8, %v1285_v50  ;;  %v1060_v3 = vpop.permute.xlu2 %1059 }
 0x18e   : > { %v1283_v37 = vpop.permute.xlu0 %1282 }
 0x18f   : > { %1321 = vst.msk [vmem:[#allocation2 + $0x28] sm:$0xf] %vm1310_vm8, %v1283_v37 }
 0x190   : > { %1410 = vst.msk [vmem:[#allocation2 + $0x28] sm:$0xf] %vm3633_vm3, %v1372_v1  ;;  %v1445_v52 = vpop.permute.xlu1 %1444 }
 0x191   : > { %1483 = vst.msk [vmem:[#allocation2 + $0x28] sm:$0xf] %vm1472_vm9, %v1445_v52  ;;  %v1220_v49 = vpop.permute.xlu2 %1219 }
 0x196   : > { %v1374_v55 = vpop.permute.xlu0 %1373 }
 0x197   : > { %1411 = vst.msk [vmem:[#allocation2 + $0x2c] sm:$0xf] %vm3634_vm6, %v1374_v55 }
 0x198   : > { %1484 = vst.msk [vmem:[#allocation2 + $0x2c] sm:$0xf] %vm1472_vm9, %v1447_v11  ;;  %v845_v57 = vpop.permute.xlu1 %844 }
 0x199   : > { %880 = vst.msk [vmem:[#allocation2 + $0x34] sm:$0xf] %vm3635_vm13, %v845_v57  ;;  %v1289_v58 = vpop.permute.xlu2 %1288 }
 0x19d   : > { %v1617_v8 = vpop.f32.mrf.mxu0 }
 0x19e   : > { %v843_v32 = vpop.permute.xlu0 %842  ;;  %v1618_v61 = vadd.f32 %v3332_v46, %v1617_v8 }
 0x19f   : > { %879 = vst.msk [vmem:[#allocation2 + $0x30] sm:$0xf] %vm3636_vm11, %v843_v32  ;;  %v2028_v34 = vld [vmem:[#allocation2 + $0x28] sm:$0xff] }
 0x1a0   : > { %1027 = vst.msk [vmem:[#allocation2 + $0x30] sm:$0xf] %vm1014_vm14, %v991_v39  ;;  %1981 = vmatmul.msk.bf16.vlgmr.msra.gmra.mxu3 %vm1569_vm4, %v2028_v34  ;;  %v1058_v31 = vpop.permute.xlu1 %1057  ;;  %v1651_v12 = vmax.f32 %v1618_v61, 0.0 }
 0x1a1   : > { %1094 = vst.msk [vmem:[#allocation2 + $0x30] sm:$0xf] %vm1081_vm15, %v1058_v31  ;;  %v1449_v63 = vpop.permute.xlu2 %1448 }
 0x1a5   : > { %v1619_v54 = vpop.f32.mrf.mxu0 }
 0x1a6   : > { %v993_v2 = vpop.permute.xlu0 %992  ;;  %v1620_v25 = vadd.f32 %v3332_v46, %v1619_v54 }
 0x1a7   : > { %1028 = vst.msk [vmem:[#allocation2 + $0x34] sm:$0xf] %vm1014_vm14, %v993_v2 }
 0x1a8   : > { %1095 = vst.msk [vmem:[#allocation2 + $0x34] sm:$0xf] %vm1081_vm15, %v1060_v3  ;;  %v1652_v14 = vmax.f32 %v1620_v25, 0.0  ;;  %v1149_v18 = vpop.permute.xlu1 %1148 }
 0x1a9   : > { %1184 = vst.msk [vmem:[#allocation2 + $0x34] sm:$0xf] %vm1170_vm0, %v1149_v18  ;;  %v849_v21 = vpop.permute.xlu2 %848 }
 0x1aa   : > { %v1665_v19 = vpack.c.bf16 %v1652_v14, %v1651_v12  ;;  %882 = vst.msk [vmem:[#allocation2 + $0x3c] sm:$0xf] %vm3637_vm12, %v849_v21 }
 0x1ac   : > { %1757 = vmatmul.bf16.gmra.mxu1 %v1665_v19 }
 0x1ae   : > { %v1147_v26 = vpop.permute.xlu0 %1146 }
 0x1af   : > { %1183 = vst.msk [vmem:[#allocation2 + $0x30] sm:$0xf] %vm1170_vm0, %v1147_v26 }
 0x1b0   : > { %1256 = vst.msk [vmem:[#allocation2 + $0x30] sm:$0xf] %vm1243_vm1, %v1220_v49  ;;  %v1287_v27 = vpop.permute.xlu1 %1286 }
 0x1b1   : > { %1323 = vst.msk [vmem:[#allocation2 + $0x30] sm:$0xf] %vm1310_vm8, %v1287_v27  ;;  %v1062_v35 = vpop.permute.xlu2 %1061 }
 0x1b6   : > { %v1222_v28 = vpop.permute.xlu0 %1221 }
 0x1b7   : > { %1257 = vst.msk [vmem:[#allocation2 + $0x34] sm:$0xf] %vm1243_vm1, %v1222_v28 }
 0x1b8   : > { %1324 = vst.msk [vmem:[#allocation2 + $0x34] sm:$0xf] %vm1310_vm8, %v1289_v58  ;;  %v1378_v60 = vpop.permute.xlu1 %1377 }
 0x1b9   : > { %1413 = vst.msk [vmem:[#allocation2 + $0x34] sm:$0xf] %vm3638_vm7, %v1378_v60  ;;  %v1153_v53 = vpop.permute.xlu2 %1152 }
 0x1be   : > { %v1376_v33 = vpop.permute.xlu0 %1375 }
 0x1bf   : > { %1412 = vst.msk [vmem:[#allocation2 + $0x30] sm:$0xf] %vm3639_vm5, %v1376_v33 }
 0x1c0   : > { %1485 = vst.msk [vmem:[#allocation2 + $0x30] sm:$0xf] %vm1472_vm9, %v1449_v63  ;;  %v847_v22 = vpop.permute.xlu1 %846 }
 0x1c1   : > { %881 = vst.msk [vmem:[#allocation2 + $0x38] sm:$0xf] %vm3640_vm2, %v847_v22  ;;  %v1291_v42 = vpop.permute.xlu2 %1290 }
 0x1c6   : > { %v1451_v47 = vpop.permute.xlu0 %1450 }
 0x1c7   : > { %1486 = vst.msk [vmem:[#allocation2 + $0x34] sm:$0xf] %vm1472_vm9, %v1451_v47 }
 0x1c8   : > { %v997_v36 = vpop.permute.xlu1 %996 }
 0x1c9   : > { %1030 = vst.msk [vmem:[#allocation2 + $0x3c] sm:$0xf] %vm1014_vm14, %v997_v36  ;;  %v1382_v0 = vpop.permute.xlu2 %1381 }
 0x1cc   : > { %v1622_v6 = vpop.f32.mrf.mxu0 }
 0x1cd   : > { %v1623_v30 = vadd.f32 %v3332_v46, %v1622_v6 }
 0x1ce   : > { %v995_v51 = vpop.permute.xlu0 %994  ;;  %v2029_v4 = vld [vmem:[#allocation2 + $0x30] sm:$0xff] }
 0x1cf   : > { %1029 = vst.msk [vmem:[#allocation2 + $0x38] sm:$0xf] %vm1014_vm14, %v995_v51  ;;  %1982 = vmatmul.msk.bf16.gmra.mxu3 %vm1569_vm4, %v2029_v4  ;;  %v1653_v17 = vmax.f32 %v1623_v30, 0.0  ;;  %vm3641_vm14 = vmmov %vm3633_vm3 }
 0x1d0   : > { %1096 = vst.msk [vmem:[#allocation2 + $0x38] sm:$0xf] %vm1081_vm15, %v1062_v35  ;;  %v1151_v9 = vpop.permute.xlu1 %1150 }
 0x1d1   : > { %1185 = vst.msk [vmem:[#allocation2 + $0x38] sm:$0xf] %vm1170_vm0, %v1151_v9 }
 0x1d4   : > { %v1624_v38 = vpop.f32.mrf.mxu0 }
 0x1d5   : > { %v1625_v5 = vadd.f32 %v3332_v46, %v1624_v38 }
 0x1d6   : > { %v1064_v15 = vpop.permute.xlu0 %1063 }
 0x1d7   : > { %1097 = vst.msk [vmem:[#allocation2 + $0x3c] sm:$0xf] %vm1081_vm15, %v1064_v15  ;;  %v1654_v40 = vmax.f32 %v1625_v5, 0.0  ;;  %vm3642_vm15 = vmmov %vm3633_vm3 }
 0x1d8   : > { %1186 = vst.msk [vmem:[#allocation2 + $0x3c] sm:$0xf] %vm1170_vm0, %v1153_v53  ;;  %v1748_v13 = vpop.f32.mrf.mxu1  ;;  %v1226_v20 = vpop.permute.xlu1 %1225 }
 0x1d9   : > { %v1666_v1 = vpack.c.bf16 %v1654_v40, %v1653_v17  ;;  %1259 = vst.msk [vmem:[#allocation2 + $0x3c] sm:$0xf] %vm1243_vm1, %v1226_v20  ;;  %v1749_v23 = vadd.f32 %v3464_v24, %v1748_v13 }
 0x1db   : > { %1762 = vmatmul.bf16.gmra.mxu1 %v1666_v1 }
 0x1de   : > { %v1224_v16 = vpop.permute.xlu0 %1223 }
 0x1df   : > { %1258 = vst.msk [vmem:[#allocation2 + $0x38] sm:$0xf] %vm1243_vm1, %v1224_v16 }
 0x1e0   : > { %1325 = vst.msk [vmem:[#allocation2 + $0x38] sm:$0xf] %vm1310_vm8, %v1291_v42  ;;  %v1750_v10 = vpop.f32.mrf.mxu1  ;;  %v1380_v7 = vpop.permute.xlu1 %1379 }
 0x1e1   : > { %v1751_v29 = vadd.f32 %v3464_v24, %v1750_v10  ;;  %1414 = vst.msk [vmem:[#allocation2 + $0x38] sm:$0xf] %vm3641_vm14, %v1380_v7 }
 0x1e3   : > { %v2045_v11 = vpack.c.bf16 %v1751_v29, %v1749_v23 }
 0x1e5   : > { %2046 = vst [vmem:[%s3473_s21] sm:$0xff] %v2045_v11  }
 0x1e6   : > { %v1293_v43 = vpop.permute.xlu0 %1292 }
 0x1e7   : > { %1326 = vst.msk [vmem:[#allocation2 + $0x3c] sm:$0xf] %vm1310_vm8, %v1293_v43 }
 0x1e8   : > { %1415 = vst.msk [vmem:[#allocation2 + $0x3c] sm:$0xf] %vm3642_vm15, %v1382_v0  ;;  %v1455_v59 = vpop.permute.xlu1 %1454 }
 0x1e9   : > { %1488 = vst.msk [vmem:[#allocation2 + $0x3c] sm:$0xf] %vm1472_vm9, %v1455_v59 }
 0x1ee   : > { %v1453_v45 = vpop.permute.xlu0 %1452 }
 0x1ef   : > { %1487 = vst.msk [vmem:[#allocation2 + $0x38] sm:$0xf] %vm1472_vm9, %v1453_v45 }
 0x1f4   : > { %v1627_v62 = vpop.f32.mrf.mxu0 }
 0x1f5   : > { %v1628_v56 = vadd.f32 %v3332_v46, %v1627_v62 }
 0x1f6   : > { %v2030_v44 = vld [vmem:[#allocation2 + $0x38] sm:$0xff] }
 0x1f7   : > { %1983 = vmatmul.msk.bf16.gmra.mxu3 %vm1569_vm4, %v2030_v44  ;;  %v1655_v41 = vmax.f32 %v1628_v56, 0.0 }
 0x1fc   : > { %v1629_v48 = vpop.f32.mrf.mxu0 }
 0x1fd   : > { %v1630_v39 = vadd.f32 %v3332_v46, %v1629_v48 }
 0x1ff   : > { %v1656_v50 = vmax.f32 %v1630_v39, 0.0 }
 0x200   : > { %v1753_v3 = vpop.f32.mrf.mxu1 }
 0x201   : > { %v1667_v37 = vpack.c.bf16 %v1656_v50, %v1655_v41  ;;  %v1754_v49 = vadd.f32 %v3464_v24, %v1753_v3 }
 0x203   : > { %1767 = vmatmul.bf16.vlgmr.msra.gmra.mxu2 %v1667_v37 }
 0x208   : > { %v1755_v52 = vpop.f32.mrf.mxu1 }
 0x209   : > { %v1756_v55 = vadd.f32 %v3464_v24, %v1755_v52 }
 0x20b   : > { %v2050_v57 = vpack.c.bf16 %v1756_v55, %v1754_v49 }
 0x20d   : > { %2082 = vst [vmem:[%s3473_s21 + $0x8] sm:$0xff] %v2050_v57  }
 0x223   : > { %v1632_v58 = vpop.f32.mrf.mxu3 }
 0x224   : > { %v1633_v8 = vadd.f32 %v3332_v46, %v1632_v58 }
 0x226   : > { %v1657_v61 = vmax.f32 %v1633_v8, 0.0 }
 0x229   : > { %v1758_v32 = vpop.f32.mrf.mxu1 }
 0x22a   : > { %v1759_v25 = vadd.f32 %v3464_v24, %v1758_v32 }
 0x22b   : > { %v1634_v34 = vpop.f32.mrf.mxu3 }
 0x22c   : > { %v1635_v31 = vadd.f32 %v3332_v46, %v1634_v34 }
 0x22e   : > { %v1658_v63 = vmax.f32 %v1635_v31, 0.0 }
 0x230   : > { %v1668_v2 = vpack.c.bf16 %v1658_v63, %v1657_v61 }
 0x231   : > { %v1760_v54 = vpop.f32.mrf.mxu1 }
 0x232   : > { %v1761_v12 = vadd.f32 %v3464_v24, %v1760_v54  ;;  %1772 = vmatmul.bf16.gmra.mxu2 %v1668_v2 }
 0x234   : > { %v2055_v14 = vpack.c.bf16 %v1761_v12, %v1759_v25 }
 0x236   : > { %2083 = vst [vmem:[%s3473_s21 + $0x10] sm:$0xff] %v2055_v14  }
 0x252   : > { %v1637_v18 = vpop.f32.mrf.mxu3 }
 0x253   : > { %v1638_v21 = vadd.f32 %v3332_v46, %v1637_v18 }
 0x255   : > { %v1659_v28 = vmax.f32 %v1638_v21, 0.0 }
 0x258   : > { %v1763_v19 = vpop.f32.mrf.mxu1 }
 0x259   : > { %v1764_v47 = vadd.f32 %v3464_v24, %v1763_v19 }
 0x25a   : > { %v1639_v26 = vpop.f32.mrf.mxu3 }
 0x25b   : > { %v1640_v27 = vadd.f32 %v3332_v46, %v1639_v26 }
 0x25d   : > { %v1660_v60 = vmax.f32 %v1640_v27, 0.0 }
 0x25f   : > { %v1669_v33 = vpack.c.bf16 %v1660_v60, %v1659_v28 }
 0x260   : > { %v1765_v22 = vpop.f32.mrf.mxu1 }
 0x261   : > { %v1766_v35 = vadd.f32 %v3464_v24, %v1765_v22  ;;  %1777 = vmatmul.bf16.gmra.mxu2 %v1669_v33 }
 0x263   : > { %v2060_v36 = vpack.c.bf16 %v1766_v35, %v1764_v47 }
 0x265   : > { %2084 = vst [vmem:[%s3473_s21 + $0x18] sm:$0xff] %v2060_v36  }
 0x27a   : > { %v1642_v6 = vpop.f32.mrf.mxu3 }
 0x27b   : > { %v1643_v51 = vadd.f32 %v3332_v46, %v1642_v6 }
 0x27d   : > { %v1661_v53 = vmax.f32 %v1643_v51, 0.0 }
 0x282   : > { %v1644_v4 = vpop.f32.mrf.mxu3 }
 0x283   : > { %v1645_v9 = vadd.f32 %v3332_v46, %v1644_v4 }
 0x285   : > { %v1662_v30 = vmax.f32 %v1645_v9, 0.0 }
 0x286   : > { %v1768_v38 = vpop.f32.mrf.mxu2 }
 0x287   : > { %v1670_v15 = vpack.c.bf16 %v1662_v30, %v1661_v53  ;;  %v1769_v17 = vadd.f32 %v3464_v24, %v1768_v38 }
 0x289   : > { %1782 = vmatmul.bf16.gmra.mxu2 %v1670_v15 }
 0x28e   : > { %v1770_v5 = vpop.f32.mrf.mxu2 }
 0x28f   : > { %v1771_v40 = vadd.f32 %v3464_v24, %v1770_v5 }
 0x291   : > { %v2065_v13 = vpack.c.bf16 %v1771_v40, %v1769_v17 }
 0x293   : > { %2085 = vst [vmem:[%s3473_s21 + $0x20] sm:$0xff] %v2065_v13  }
 0x2b5   : > { %v1773_v20 = vpop.f32.mrf.mxu2 }
 0x2b6   : > { %v1774_v46 = vadd.f32 %v3464_v24, %v1773_v20 }
 0x2bd   : > { %v1775_v1 = vpop.f32.mrf.mxu2 }
 0x2be   : > { %v1776_v42 = vadd.f32 %v3464_v24, %v1775_v1 }
 0x2c0   : > { %v2070_v16 = vpack.c.bf16 %v1776_v42, %v1774_v46 }
 0x2c2   : > { %2086 = vst [vmem:[%s3473_s21 + $0x28] sm:$0xff] %v2070_v16  }
 0x2e4   : > { %v1778_v10 = vpop.f32.mrf.mxu2 }
 0x2e5   : > { %v1779_v23 = vadd.f32 %v3464_v24, %v1778_v10 }
 0x2ec   : > { %v1780_v7 = vpop.f32.mrf.mxu2 }
 0x2ed   : > { %v1781_v29 = vadd.f32 %v3464_v24, %v1780_v7 }
 0x2ef   : > { %v2075_v11 = vpack.c.bf16 %v1781_v29, %v1779_v23 }
 0x2f1   : > { %2087 = vst [vmem:[%s3473_s21 + $0x30] sm:$0xff] %v2075_v11  }
 0x30c   : > { %v1783_v0 = vpop.f32.mrf.mxu2 }
 0x30d   : > { %v1784_v59 = vadd.f32 %v3464_v24, %v1783_v0 }
 0x314   : > { %v1785_v43 = vpop.f32.mrf.mxu2 }
 0x315   : > { %v1786_v45 = vadd.f32 %v3464_v24, %v1785_v43 }
 0x317   : > { %v2080_v62 = vpack.c.bf16 %v1786_v45, %v1784_v59 }
 0x319   : > { %2088 = vst [vmem:[%s3473_s21 + $0x38] sm:$0xff] %v2080_v62  }
 0x31a   : > { %2214 = shalt.err (!%p2211_p6)
}
 0x31b   : > { %s2291_s0 = smov 64   ;;  %s3643_s21 = smov 4  }
 0x31c   : > { %2101 = dma.vmem_to_hbm [thread:$0]  (%p2383_p3), %s1837_s18, 1024, %s1839_s10, %s1821_s27, %s2291_s0, %s2291_s0, %s3643_s21  }
 0x31d PF: > { %p2107_p7 = scmp.ge.s32.totalorder %s2281_s8, 2  ;;  %s1853_s16 = sand.u32 1, %s2253_s24  }
 0x31e   : > { %s1854_s23 = scalar_lea.sflag [#allocation4], %s1853_s16 }
 0x31f   : > { %p2104_p9 = pnand %p2107_p7, %p2392_p8 }
 0x321   : > { %p2105_p10 = pneg %p2104_p9 }
 0x323   : > { %2248 = dma.done.wait (%p2105_p10), %s1854_s23, 1024  }
 0x324   : > { %2250 = vsyncadd (%p2105_p10), %s1854_s23, 4294966272  ;;  %s20_s8 = sadd.s32 1, %s2281_s8   ;;  %s3644_s24 = smov %s2257_s25 }
 0x325   : > { %p17_p11 = scmp.ge.s32.totalorder %s20_s8, 6   ;;  %s3645_s25 = smov %s2261_s26 }
 0x326   : > { %s3646_s26 = smov %s2401_s19  ;;  %s3647_s27 = smov %s2273_s29 }
 0x327   : > { %s3648_s28 = smov %s2277_s30  ;;  %s3649_s29 = smov %s3652_s11 }
 0x328   : > { %s3650_s30 = smov %s3656_s12  ;;  %19 = sbr.rel (!%p17_p11) target bundleno = 7 (0x7), region = 83 }
 0x32d   :  { %1860 = vsyncpa [#allocation4], 1 }
 0x32e   :  { %1862 = vsyncpa [#allocation4 + $0x1], 1 }

</bundles_post_ra>
